<compile_context>
chip_gen: v7x
topology: tpu7x:2x2x1
jax: 0.10.0
libtpu: 0.0.40
codegen_flags: <defaults>
</compile_context>

<pallas_src>
import numpy as np

import jax
import jax.numpy as jnp
from jax.experimental import pallas as pl
from jax.experimental.pallas import tpu as pltpu


# ----------------------------------------------------------------------------
# Host-side (compile-time) structural matrices
# ----------------------------------------------------------------------------
def _bilinear_matrix(out_size, in_size, align_corners):
    """PyTorch F.interpolate(mode='bilinear') weights along one axis."""
    M = np.zeros((out_size, in_size), dtype=np.float32)
    for o in range(out_size):
        if align_corners:
            src = 0.0 if out_size == 1 else o * (in_size - 1) / (out_size - 1)
        else:
            src = (o + 0.5) * (in_size / out_size) - 0.5
            src = max(src, 0.0)
        i0 = min(int(np.floor(src)), in_size - 1)
        i1 = min(i0 + 1, in_size - 1)
        frac = src - i0
        M[o, i0] += 1.0 - frac
        M[o, i1] += frac
    return M


def _select_matrix(n_in, n_out, stride):
    """S[t, i, o] = 1 if i == stride*o + t - 1 (3-tap window, zero pad of 1)."""
    S = np.zeros((3, n_in, n_out), dtype=np.float32)
    for t in range(3):
        for o in range(n_out):
            i = stride * o + t - 1
            if 0 <= i < n_in:
                S[t, i, o] = 1.0
    return S


# ----------------------------------------------------------------------------
# Wrapper-side folding of runtime weights into right-multiply matrices
# ----------------------------------------------------------------------------
def _dw_right(sel, wd, eye_c):
    """Banded block-diagonal right matrices for a depthwise 3x3 conv.

    sel: (3, nb_in, nb_out) host 0/1 selection (per horizontal tap dx).
    wd:  (3, 3, C) depthwise weights (BN scale already folded in).
    Returns (3, nb_in*C, nb_out*C); index dy selects the vertical tap.
    """
    sel = jnp.asarray(sel)
    t = jnp.einsum('xio,yxc->yioc', sel, wd)          # sum over dx
    R = jnp.einsum('yioc,ce->yicoe', t, eye_c)        # expand delta(c, e)
    C = eye_c.shape[0]
    return R.reshape(3, sel.shape[1] * C, sel.shape[2] * C)


def _dense_right(sel, w3):
    """Banded right matrices for a dense 3x3 conv (w3: (3,3,Cin,Cout))."""
    sel = jnp.asarray(sel)
    C = w3.shape[2]
    R = jnp.einsum('xio,yxce->yicoe', sel, w3)        # sum over dx
    return R.reshape(3, sel.shape[1] * C, sel.shape[2] * C)


# ----------------------------------------------------------------------------
# In-kernel helpers
# ----------------------------------------------------------------------------
def _mm(a, b):
    """bf16 MXU matmul with f32 accumulation."""
    return jnp.dot(a.astype(jnp.bfloat16), b.astype(jnp.bfloat16),
                   preferred_element_type=jnp.float32)


def _sigmoid(x):
    # exp on the EUP, approx reciprocal also on the EUP -> no VALU divide.
    return pl.reciprocal(1.0 + jnp.exp(-x), approx=True)


def _conv3(x_b, l_ref, r_ref, middle_identity):
    """sum_dy L[dy] @ (x @ R[dy]) — a 3x3 conv (dense or depthwise, any stride,
    optionally with a folded 1x1 / avg-pool) in the packed (rows, W*C) layout.
    If `middle_identity`, the dy==1 left matrix is the identity and is skipped."""
    acc = None
    for dy in range(3):
        t = _mm(x_b, r_ref[dy])
        if not (middle_identity and dy == 1):
            t = _mm(l_ref[dy], t)
        acc = t if acc is None else acc + t
    return acc


# ----------------------------------------------------------------------------
# Kernel
# ----------------------------------------------------------------------------
def _bga_kernel(dfm_ref, sfm_ref,
                lshH_ref, ldown_ref, lshh_ref, uh_ref,
                rdd_ref, rfin_ref, rdn_ref, rsem_ref, rsd_ref, rup_ref,
                bW_ref, bdd_ref, bl_ref,
                out_ref):
    xb = dfm_ref[0].astype(jnp.bfloat16)   # (H, W*C)   packed lane = w*C + c
    sb = sfm_ref[0].astype(jnp.bfloat16)   # (h, w*C)

    bW = bW_ref[...]                        # (2, W*C)  [detail_dw, final]
    bdd = bdd_ref[...]                      # (h, w*C)  detail_down bias map
    bl = bl_ref[...]                        # (2, w*C)  [semantic_conv, semantic_dw]
    uh = uh_ref[...]                        # (H, h)    bilinear rows
    rup = rup_ref[...]                      # (w*C, W*C) bilinear lanes (kron I_C)

    # --- detail_dwconv: dw3x3 (BN scale) -> 1x1 (folded into rdd); BN bias after.
    detail_dw = _conv3(xb, lshH_ref, rdd_ref, True) + bW[0:1, :]          # (H, W*C)

    # --- detail_down: dw3x3 stride-2 (BN scale) + AvgPool 3x3/s2 folded into
    #     ldown / rdn; BN bias pushed through the pool as a precomputed map.
    detail_down = _conv3(xb, ldown_ref, rdn_ref, False) + bdd             # (h, w*C)

    # --- semantic_conv: dense 3x3 (BN scale) + bias; bilinear up = 2 matmuls.
    sc = _conv3(sb, lshh_ref, rsem_ref, True) + bl[0:1, :]                # (h, w*C)
    sc_up = _mm(uh, _mm(sc, rup))                                         # (H, W*C)

    # --- semantic_dwconv: dw3x3 (BN scale) -> 1x1 (folded into rsd); bias after.
    sd = _conv3(sb, lshh_ref, rsd_ref, True) + bl[1:2, :]                 # (h, w*C)

    # --- fuse
    fuse1 = detail_dw * _sigmoid(sc_up)
    fuse2 = detail_down * _sigmoid(sd)
    fused = fuse1 + _mm(uh, _mm(fuse2, rup))                              # (H, W*C)

    # --- final conv: dw3x3 (BN scale folded) + BN bias, ReLU
    out = _conv3(fused.astype(jnp.bfloat16), lshH_ref, rfin_ref, True) + bW[1:2, :]
    out_ref[0] = jnp.maximum(out, 0.0).astype(out_ref.dtype)


# ----------------------------------------------------------------------------
# Operand preparation (fold BN scales / biases / 1x1 / pooling into matrices)
# ----------------------------------------------------------------------------
def _prepare_operands(p, H, W, h, w, C, align_corners):
    f32 = jnp.float32
    bf16 = jnp.bfloat16
    bns, bnb = p["bn_scale"], p["bn_bias"]            # (5, C) each
    eye_c = jnp.eye(C, dtype=f32)

    # Row-direction (left) matrices: host constants.
    LshH = jnp.asarray(_select_matrix(H, H, 1).transpose(0, 2, 1))         # (3,H,H), [1]=I
    Ls2 = jnp.asarray(_select_matrix(H, H // 2, 2).transpose(0, 2, 1))     # (3,H/2,H)
    Lpool = jnp.asarray(_select_matrix(H // 2, H // 4, 2).sum(0).T / 9.0)  # (h,H/2)
    Ldown = jnp.einsum('ri,yij->yrj', Lpool, Ls2)                          # (3,h,H)
    Lshh = jnp.asarray(_select_matrix(h, h, 1).transpose(0, 2, 1))         # (3,h,h), [1]=I
    Uh = jnp.asarray(_bilinear_matrix(H, h, align_corners))                # (H,h)

    # Lane-direction (right) matrices: runtime weights folded in.
    selW = _select_matrix(W, W, 1)
    selW2 = _select_matrix(W, W // 2, 2)
    selw = _select_matrix(w, w, 1)
    M1a = jnp.kron(jnp.eye(W, dtype=f32), p["w1_detail"])                  # (W*C,W*C)
    M1b = jnp.kron(jnp.eye(w, dtype=f32), p["w1_sem"])                     # (w*C,w*C)
    Rpool = jnp.kron(jnp.asarray(_select_matrix(W // 2, w, 2).sum(0)), eye_c)  # ((W/2)*C,w*C)

    Rdd = jnp.einsum('yij,jk->yik',
                     _dw_right(selW, p["dw_detail"] * bns[0], eye_c), M1a)   # (3,W*C,W*C)
    Rfin = _dw_right(selW, p["dw_out"] * bns[4], eye_c)                      # (3,W*C,W*C)
    Rdn = jnp.einsum('yij,jk->yik',
                     _dw_right(selW2, p["dw_down"] * bns[1], eye_c), Rpool)  # (3,W*C,w*C)
    Rsem = _dense_right(selw, p["w3_sem"] * bns[2][None, None, None, :])     # (3,w*C,w*C)
    Rsd = jnp.einsum('yij,jk->yik',
                     _dw_right(selw, p["dw_sem"] * bns[3], eye_c), M1b)      # (3,w*C,w*C)
    Uw = jnp.asarray(_bilinear_matrix(W, w, align_corners))
    Rup = jnp.kron(Uw.T, eye_c)                                              # (w*C,W*C)

    # Biases (BN biases, pushed through the following linear ops where needed).
    bW = jnp.stack([jnp.tile(bnb[0] @ p["w1_detail"], W),
                    jnp.tile(bnb[4], W)]).astype(f32)                        # (2,W*C)
    b_dn_row = jnp.tile(bnb[1], W // 2)[None, :] @ Rpool                     # (1,w*C)
    bdd = (jnp.sum(Lpool, axis=1, keepdims=True) @ b_dn_row).astype(f32)     # (h,w*C)
    bl = jnp.stack([jnp.tile(bnb[2], w),
                    jnp.tile(bnb[3] @ p["w1_sem"], w)]).astype(f32)          # (2,w*C)

    mats = [LshH, Ldown, Lshh, Uh, Rdd, Rfin, Rdn, Rsem, Rsd, Rup]
    mats = [m.astype(bf16) for m in mats]     # halve DMA/VMEM of the constants
    return mats + [bW, bdd, bl]


# ----------------------------------------------------------------------------
# Public wrapper
# ----------------------------------------------------------------------------
def bilateral_guided_aggregation(dfm, sfm, params, align_corners=False,
                                 data_format="NCHW"):
    """BGA forward. data_format='NHWC' avoids the NCHW<->NHWC wrapper transposes."""
    if data_format == "NCHW":
        dfm = jnp.transpose(dfm, (0, 2, 3, 1))
        sfm = jnp.transpose(sfm, (0, 2, 3, 1))
    N, H, W, C = dfm.shape
    _, h, w, _ = sfm.shape
    assert H % 4 == 0 and W % 4 == 0 and h == H // 4 and w == W // 4, \
        "BGA expects sfm at exactly 1/4 of dfm's spatial resolution."

    operands = _prepare_operands(params, H, W, h, w, C, align_corners)

    dfm_p = dfm.reshape(N, H, W * C)      # lane-dense packed layout
    sfm_p = sfm.reshape(N, h, w * C)

    def _const_spec(a):
        return pl.BlockSpec(a.shape, lambda n, nd=a.ndim: (0,) * nd)

    in_specs = ([pl.BlockSpec((1, H, W * C), lambda n: (n, 0, 0)),
                 pl.BlockSpec((1, h, w * C), lambda n: (n, 0, 0))]
                + [_const_spec(a) for a in operands])

    out_p = pl.pallas_call(
        _bga_kernel,
        out_shape=jax.ShapeDtypeStruct((N, H, W * C), dfm.dtype),
        grid=(N,),
        in_specs=in_specs,
        out_specs=pl.BlockSpec((1, H, W * C), lambda n: (n, 0, 0)),
        compiler_params=pltpu.CompilerParams(
            dimension_semantics=("parallel",),
            vmem_limit_bytes=32 * 1024 * 1024),
    )(dfm_p, sfm_p, *operands)

    out = out_p.reshape(N, H, W, C)
    if data_format == "NCHW":
        out = jnp.transpose(out, (0, 3, 1, 2))
    return out


# ----------------------------------------------------------------------------
# Synthetic parameters matching the PyTorch module's parameter shapes
# ----------------------------------------------------------------------------
def init_params(key, C):
    ks = jax.random.split(key, 11)
    p = dict(
        dw_detail=jax.random.normal(ks[0], (3, 3, C), jnp.float32) * 0.3,
        w1_detail=jax.random.normal(ks[1], (C, C), jnp.float32) * 0.3,
        dw_down=jax.random.normal(ks[2], (3, 3, C), jnp.float32) * 0.3,
        w3_sem=jax.random.normal(ks[3], (3, 3, C, C), jnp.float32) * 0.3,
        dw_sem=jax.random.normal(ks[4], (3, 3, C), jnp.float32) * 0.3,
        w1_sem=jax.random.normal(ks[5], (C, C), jnp.float32) * 0.3,
        dw_out=jax.random.normal(ks[6], (3, 3, C), jnp.float32) * 0.3,
    )
    # Five BatchNorm2d layers (inference mode), folded into scale/bias.
    gamma = 1.0 + 0.1 * jax.random.normal(ks[7], (5, C), jnp.float32)
    beta = 0.1 * jax.random.normal(ks[8], (5, C), jnp.float32)
    mean = 0.1 * jax.random.normal(ks[9], (5, C), jnp.float32)
    var = jnp.abs(1.0 + 0.1 * jax.random.normal(ks[10], (5, C), jnp.float32))
    scale = gamma / jnp.sqrt(var + 1e-5)
    p["bn_scale"] = scale
    p["bn_bias"] = beta - mean * scale
    return p


if __name__ == "__main__":
    key = jax.random.PRNGKey(0)
    k_d, k_s, k_p = jax.random.split(key, 3)

    N, C, H, W = 2, 8, 16, 16            # dfm at full res, sfm at 1/4 res (BiSeNetV2 BGA)
    h, w = H // 4, W // 4

    # NHWC fast path (transpose-free); pass data_format="NCHW" for PyTorch-layout tensors.
    dfm = jax.random.normal(k_d, (N, H, W, C), jnp.float32)
    sfm = jax.random.normal(k_s, (N, h, w, C), jnp.float32)

    params = init_params(k_p, C)

    out = bilateral_guided_aggregation(dfm, sfm, params, align_corners=False,
                                       data_format="NHWC")
    out = jax.block_until_ready(out)
    assert out.shape == (N, H, W, C)
    assert bool(jnp.all(jnp.isfinite(out)))
    print("KERNEL_OK")
</pallas_src>

<mosaic_0001>
module attributes {stable_mosaic.version = 11 : i64} {
  func.func @_bga_kernel(%arg0: i32, %arg1: memref<1x16x128xf32, #tpu.memory_space<vmem>>, %arg2: memref<1x4x32xf32, #tpu.memory_space<vmem>>, %arg3: memref<3x16x16xbf16, #tpu.memory_space<vmem>>, %arg4: memref<3x4x16xbf16, #tpu.memory_space<vmem>>, %arg5: memref<3x4x4xbf16, #tpu.memory_space<vmem>>, %arg6: memref<16x4xbf16, #tpu.memory_space<vmem>>, %arg7: memref<3x128x128xbf16, #tpu.memory_space<vmem>>, %arg8: memref<3x128x128xbf16, #tpu.memory_space<vmem>>, %arg9: memref<3x128x32xbf16, #tpu.memory_space<vmem>>, %arg10: memref<3x32x32xbf16, #tpu.memory_space<vmem>>, %arg11: memref<3x32x32xbf16, #tpu.memory_space<vmem>>, %arg12: memref<32x128xbf16, #tpu.memory_space<vmem>>, %arg13: memref<2x128xf32, #tpu.memory_space<vmem>>, %arg14: memref<4x32xf32, #tpu.memory_space<vmem>>, %arg15: memref<2x32xf32, #tpu.memory_space<vmem>>, %arg16: memref<1x16x128xf32, #tpu.memory_space<vmem>>) attributes {dimension_semantics = [#tpu.dimension_semantics<parallel>], iteration_bounds = array<i64: 2>, scalar_prefetch = 0 : i64, scratch_operands = 0 : i64, tpu.core_type = #tpu.core_type<tc>, window_params = [{transform_indices = @transform_0, window_bounds = array<i64: 1, 16, 128>}, {transform_indices = @transform_1, window_bounds = array<i64: 1, 4, 32>}, {pipeline_mode = #tpu.pipeline_mode<synchronous>, transform_indices = @transform_2, window_bounds = array<i64: 3, 16, 16>}, {pipeline_mode = #tpu.pipeline_mode<synchronous>, transform_indices = @transform_3, window_bounds = array<i64: 3, 4, 16>}, {pipeline_mode = #tpu.pipeline_mode<synchronous>, transform_indices = @transform_4, window_bounds = array<i64: 3, 4, 4>}, {pipeline_mode = #tpu.pipeline_mode<synchronous>, transform_indices = @transform_5, window_bounds = array<i64: 16, 4>}, {pipeline_mode = #tpu.pipeline_mode<synchronous>, transform_indices = @transform_6, window_bounds = array<i64: 3, 128, 128>}, {pipeline_mode = #tpu.pipeline_mode<synchronous>, transform_indices = @transform_7, window_bounds = array<i64: 3, 128, 128>}, {pipeline_mode = #tpu.pipeline_mode<synchronous>, transform_indices = @transform_8, window_bounds = array<i64: 3, 128, 32>}, {pipeline_mode = #tpu.pipeline_mode<synchronous>, transform_indices = @transform_9, window_bounds = array<i64: 3, 32, 32>}, {pipeline_mode = #tpu.pipeline_mode<synchronous>, transform_indices = @transform_10, window_bounds = array<i64: 3, 32, 32>}, {pipeline_mode = #tpu.pipeline_mode<synchronous>, transform_indices = @transform_11, window_bounds = array<i64: 32, 128>}, {pipeline_mode = #tpu.pipeline_mode<synchronous>, transform_indices = @transform_12, window_bounds = array<i64: 2, 128>}, {pipeline_mode = #tpu.pipeline_mode<synchronous>, transform_indices = @transform_13, window_bounds = array<i64: 4, 32>}, {pipeline_mode = #tpu.pipeline_mode<synchronous>, transform_indices = @transform_14, window_bounds = array<i64: 2, 32>}, {transform_indices = @transform_15, window_bounds = array<i64: 1, 16, 128>}]} {
    %c0 = arith.constant 0 : index
    %c0_0 = arith.constant 0 : index
    %c0_1 = arith.constant 0 : index
    %0 = vector.load %arg1[%c0, %c0_0, %c0_1] : memref<1x16x128xf32, #tpu.memory_space<vmem>>, vector<1x16x128xf32>
    %1 = vector.shape_cast %0 : vector<1x16x128xf32> to vector<16x128xf32>
    %2 = arith.truncf %1 : vector<16x128xf32> to vector<16x128xbf16>
    %c0_2 = arith.constant 0 : index
    %c0_3 = arith.constant 0 : index
    %c0_4 = arith.constant 0 : index
    %3 = vector.load %arg2[%c0_2, %c0_3, %c0_4] : memref<1x4x32xf32, #tpu.memory_space<vmem>>, vector<1x4x32xf32>
    %4 = vector.shape_cast %3 : vector<1x4x32xf32> to vector<4x32xf32>
    %5 = arith.truncf %4 : vector<4x32xf32> to vector<4x32xbf16>
    %c0_5 = arith.constant 0 : index
    %c0_6 = arith.constant 0 : index
    %6 = vector.load %arg13[%c0_5, %c0_6] : memref<2x128xf32, #tpu.memory_space<vmem>>, vector<2x128xf32>
    %c0_7 = arith.constant 0 : index
    %c0_8 = arith.constant 0 : index
    %7 = vector.load %arg14[%c0_7, %c0_8] : memref<4x32xf32, #tpu.memory_space<vmem>>, vector<4x32xf32>
    %c0_9 = arith.constant 0 : index
    %c0_10 = arith.constant 0 : index
    %8 = vector.load %arg15[%c0_9, %c0_10] : memref<2x32xf32, #tpu.memory_space<vmem>>, vector<2x32xf32>
    %c0_11 = arith.constant 0 : index
    %c0_12 = arith.constant 0 : index
    %9 = vector.load %arg6[%c0_11, %c0_12] : memref<16x4xbf16, #tpu.memory_space<vmem>>, vector<16x4xbf16>
    %c0_13 = arith.constant 0 : index
    %c0_14 = arith.constant 0 : index
    %10 = vector.load %arg12[%c0_13, %c0_14] : memref<32x128xbf16, #tpu.memory_space<vmem>>, vector<32x128xbf16>
    %c0_15 = arith.constant 0 : index
    %c0_16 = arith.constant 0 : index
    %c0_17 = arith.constant 0 : index
    %11 = vector.load %arg7[%c0_15, %c0_16, %c0_17] : memref<3x128x128xbf16, #tpu.memory_space<vmem>>, vector<1x128x128xbf16>
    %12 = vector.shape_cast %11 : vector<1x128x128xbf16> to vector<128x128xbf16>
    %cst = arith.constant dense<0.000000e+00> : vector<16x128xf32>
    %13 = tpu.matmul %2, %12, %cst {dimension_numbers = #tpu.dot_dimension_numbers<[1], [0], [0], [1], [0, 0, 1, 1], [], []>} : vector<16x128xbf16>, vector<128x128xbf16>, vector<16x128xf32> -> vector<16x128xf32>
    %c0_18 = arith.constant 0 : index
    %c0_19 = arith.constant 0 : index
    %c0_20 = arith.constant 0 : index
    %14 = vector.load %arg3[%c0_18, %c0_19, %c0_20] : memref<3x16x16xbf16, #tpu.memory_space<vmem>>, vector<1x16x16xbf16>
    %15 = vector.shape_cast %14 : vector<1x16x16xbf16> to vector<16x16xbf16>
    %16 = arith.truncf %13 : vector<16x128xf32> to vector<16x128xbf16>
    %cst_21 = arith.constant dense<0.000000e+00> : vector<16x128xf32>
    %17 = tpu.matmul %15, %16, %cst_21 {dimension_numbers = #tpu.dot_dimension_numbers<[1], [0], [0], [1], [0, 0, 1, 1], [], []>} : vector<16x16xbf16>, vector<16x128xbf16>, vector<16x128xf32> -> vector<16x128xf32>
    %c1 = arith.constant 1 : index
    %c0_22 = arith.constant 0 : index
    %c0_23 = arith.constant 0 : index
    %18 = vector.load %arg7[%c1, %c0_22, %c0_23] : memref<3x128x128xbf16, #tpu.memory_space<vmem>>, vector<1x128x128xbf16>
    %19 = vector.shape_cast %18 : vector<1x128x128xbf16> to vector<128x128xbf16>
    %cst_24 = arith.constant dense<0.000000e+00> : vector<16x128xf32>
    %20 = tpu.matmul %2, %19, %cst_24 {dimension_numbers = #tpu.dot_dimension_numbers<[1], [0], [0], [1], [0, 0, 1, 1], [], []>} : vector<16x128xbf16>, vector<128x128xbf16>, vector<16x128xf32> -> vector<16x128xf32>
    %21 = arith.addf %17, %20 : vector<16x128xf32>
    %c2 = arith.constant 2 : index
    %c0_25 = arith.constant 0 : index
    %c0_26 = arith.constant 0 : index
    %22 = vector.load %arg7[%c2, %c0_25, %c0_26] : memref<3x128x128xbf16, #tpu.memory_space<vmem>>, vector<1x128x128xbf16>
    %23 = vector.shape_cast %22 : vector<1x128x128xbf16> to vector<128x128xbf16>
    %cst_27 = arith.constant dense<0.000000e+00> : vector<16x128xf32>
    %24 = tpu.matmul %2, %23, %cst_27 {dimension_numbers = #tpu.dot_dimension_numbers<[1], [0], [0], [1], [0, 0, 1, 1], [], []>} : vector<16x128xbf16>, vector<128x128xbf16>, vector<16x128xf32> -> vector<16x128xf32>
    %c2_28 = arith.constant 2 : index
    %c0_29 = arith.constant 0 : index
    %c0_30 = arith.constant 0 : index
    %25 = vector.load %arg3[%c2_28, %c0_29, %c0_30] : memref<3x16x16xbf16, #tpu.memory_space<vmem>>, vector<1x16x16xbf16>
    %26 = vector.shape_cast %25 : vector<1x16x16xbf16> to vector<16x16xbf16>
    %27 = arith.truncf %24 : vector<16x128xf32> to vector<16x128xbf16>
    %cst_31 = arith.constant dense<0.000000e+00> : vector<16x128xf32>
    %28 = tpu.matmul %26, %27, %cst_31 {dimension_numbers = #tpu.dot_dimension_numbers<[1], [0], [0], [1], [0, 0, 1, 1], [], []>} : vector<16x16xbf16>, vector<16x128xbf16>, vector<16x128xf32> -> vector<16x128xf32>
    %29 = arith.addf %21, %28 : vector<16x128xf32>
    %30 = vector.extract_strided_slice %6 {offsets = [0, 0], sizes = [1, 128], strides = [1, 1]} : vector<2x128xf32> to vector<1x128xf32>
    %31 = vector.broadcast %30 : vector<1x128xf32> to vector<16x128xf32>
    %32 = arith.addf %29, %31 : vector<16x128xf32>
    %c0_32 = arith.constant 0 : index
    %c0_33 = arith.constant 0 : index
    %c0_34 = arith.constant 0 : index
    %33 = vector.load %arg9[%c0_32, %c0_33, %c0_34] : memref<3x128x32xbf16, #tpu.memory_space<vmem>>, vector<1x128x32xbf16>
    %34 = vector.shape_cast %33 : vector<1x128x32xbf16> to vector<128x32xbf16>
    %cst_35 = arith.constant dense<0.000000e+00> : vector<16x32xf32>
    %35 = tpu.matmul %2, %34, %cst_35 {dimension_numbers = #tpu.dot_dimension_numbers<[1], [0], [0], [1], [0, 0, 1, 1], [], []>} : vector<16x128xbf16>, vector<128x32xbf16>, vector<16x32xf32> -> vector<16x32xf32>
    %c0_36 = arith.constant 0 : index
    %c0_37 = arith.constant 0 : index
    %c0_38 = arith.constant 0 : index
    %36 = vector.load %arg4[%c0_36, %c0_37, %c0_38] : memref<3x4x16xbf16, #tpu.memory_space<vmem>>, vector<1x4x16xbf16>
    %37 = vector.shape_cast %36 : vector<1x4x16xbf16> to vector<4x16xbf16>
    %38 = arith.truncf %35 : vector<16x32xf32> to vector<16x32xbf16>
    %cst_39 = arith.constant dense<0.000000e+00> : vector<4x32xf32>
    %39 = tpu.matmul %37, %38, %cst_39 {dimension_numbers = #tpu.dot_dimension_numbers<[1], [0], [0], [1], [0, 0, 1, 1], [], []>} : vector<4x16xbf16>, vector<16x32xbf16>, vector<4x32xf32> -> vector<4x32xf32>
    %c1_40 = arith.constant 1 : index
    %c0_41 = arith.constant 0 : index
    %c0_42 = arith.constant 0 : index
    %40 = vector.load %arg9[%c1_40, %c0_41, %c0_42] : memref<3x128x32xbf16, #tpu.memory_space<vmem>>, vector<1x128x32xbf16>
    %41 = vector.shape_cast %40 : vector<1x128x32xbf16> to vector<128x32xbf16>
    %cst_43 = arith.constant dense<0.000000e+00> : vector<16x32xf32>
    %42 = tpu.matmul %2, %41, %cst_43 {dimension_numbers = #tpu.dot_dimension_numbers<[1], [0], [0], [1], [0, 0, 1, 1], [], []>} : vector<16x128xbf16>, vector<128x32xbf16>, vector<16x32xf32> -> vector<16x32xf32>
    %c1_44 = arith.constant 1 : index
    %c0_45 = arith.constant 0 : index
    %c0_46 = arith.constant 0 : index
    %43 = vector.load %arg4[%c1_44, %c0_45, %c0_46] : memref<3x4x16xbf16, #tpu.memory_space<vmem>>, vector<1x4x16xbf16>
    %44 = vector.shape_cast %43 : vector<1x4x16xbf16> to vector<4x16xbf16>
    %45 = arith.truncf %42 : vector<16x32xf32> to vector<16x32xbf16>
    %cst_47 = arith.constant dense<0.000000e+00> : vector<4x32xf32>
    %46 = tpu.matmul %44, %45, %cst_47 {dimension_numbers = #tpu.dot_dimension_numbers<[1], [0], [0], [1], [0, 0, 1, 1], [], []>} : vector<4x16xbf16>, vector<16x32xbf16>, vector<4x32xf32> -> vector<4x32xf32>
    %47 = arith.addf %39, %46 : vector<4x32xf32>
    %c2_48 = arith.constant 2 : index
    %c0_49 = arith.constant 0 : index
    %c0_50 = arith.constant 0 : index
    %48 = vector.load %arg9[%c2_48, %c0_49, %c0_50] : memref<3x128x32xbf16, #tpu.memory_space<vmem>>, vector<1x128x32xbf16>
    %49 = vector.shape_cast %48 : vector<1x128x32xbf16> to vector<128x32xbf16>
    %cst_51 = arith.constant dense<0.000000e+00> : vector<16x32xf32>
    %50 = tpu.matmul %2, %49, %cst_51 {dimension_numbers = #tpu.dot_dimension_numbers<[1], [0], [0], [1], [0, 0, 1, 1], [], []>} : vector<16x128xbf16>, vector<128x32xbf16>, vector<16x32xf32> -> vector<16x32xf32>
    %c2_52 = arith.constant 2 : index
    %c0_53 = arith.constant 0 : index
    %c0_54 = arith.constant 0 : index
    %51 = vector.load %arg4[%c2_52, %c0_53, %c0_54] : memref<3x4x16xbf16, #tpu.memory_space<vmem>>, vector<1x4x16xbf16>
    %52 = vector.shape_cast %51 : vector<1x4x16xbf16> to vector<4x16xbf16>
    %53 = arith.truncf %50 : vector<16x32xf32> to vector<16x32xbf16>
    %cst_55 = arith.constant dense<0.000000e+00> : vector<4x32xf32>
    %54 = tpu.matmul %52, %53, %cst_55 {dimension_numbers = #tpu.dot_dimension_numbers<[1], [0], [0], [1], [0, 0, 1, 1], [], []>} : vector<4x16xbf16>, vector<16x32xbf16>, vector<4x32xf32> -> vector<4x32xf32>
    %55 = arith.addf %47, %54 : vector<4x32xf32>
    %56 = arith.addf %55, %7 : vector<4x32xf32>
    %c0_56 = arith.constant 0 : index
    %c0_57 = arith.constant 0 : index
    %c0_58 = arith.constant 0 : index
    %57 = vector.load %arg10[%c0_56, %c0_57, %c0_58] : memref<3x32x32xbf16, #tpu.memory_space<vmem>>, vector<1x32x32xbf16>
    %58 = vector.shape_cast %57 : vector<1x32x32xbf16> to vector<32x32xbf16>
    %cst_59 = arith.constant dense<0.000000e+00> : vector<4x32xf32>
    %59 = tpu.matmul %5, %58, %cst_59 {dimension_numbers = #tpu.dot_dimension_numbers<[1], [0], [0], [1], [0, 0, 1, 1], [], []>} : vector<4x32xbf16>, vector<32x32xbf16>, vector<4x32xf32> -> vector<4x32xf32>
    %c0_60 = arith.constant 0 : index
    %c0_61 = arith.constant 0 : index
    %c0_62 = arith.constant 0 : index
    %60 = vector.load %arg5[%c0_60, %c0_61, %c0_62] : memref<3x4x4xbf16, #tpu.memory_space<vmem>>, vector<1x4x4xbf16>
    %61 = vector.shape_cast %60 : vector<1x4x4xbf16> to vector<4x4xbf16>
    %62 = arith.truncf %59 : vector<4x32xf32> to vector<4x32xbf16>
    %cst_63 = arith.constant dense<0.000000e+00> : vector<4x32xf32>
    %63 = tpu.matmul %61, %62, %cst_63 {dimension_numbers = #tpu.dot_dimension_numbers<[1], [0], [0], [1], [0, 0, 1, 1], [], []>} : vector<4x4xbf16>, vector<4x32xbf16>, vector<4x32xf32> -> vector<4x32xf32>
    %c1_64 = arith.constant 1 : index
    %c0_65 = arith.constant 0 : index
    %c0_66 = arith.constant 0 : index
    %64 = vector.load %arg10[%c1_64, %c0_65, %c0_66] : memref<3x32x32xbf16, #tpu.memory_space<vmem>>, vector<1x32x32xbf16>
    %65 = vector.shape_cast %64 : vector<1x32x32xbf16> to vector<32x32xbf16>
    %cst_67 = arith.constant dense<0.000000e+00> : vector<4x32xf32>
    %66 = tpu.matmul %5, %65, %cst_67 {dimension_numbers = #tpu.dot_dimension_numbers<[1], [0], [0], [1], [0, 0, 1, 1], [], []>} : vector<4x32xbf16>, vector<32x32xbf16>, vector<4x32xf32> -> vector<4x32xf32>
    %67 = arith.addf %63, %66 : vector<4x32xf32>
    %c2_68 = arith.constant 2 : index
    %c0_69 = arith.constant 0 : index
    %c0_70 = arith.constant 0 : index
    %68 = vector.load %arg10[%c2_68, %c0_69, %c0_70] : memref<3x32x32xbf16, #tpu.memory_space<vmem>>, vector<1x32x32xbf16>
    %69 = vector.shape_cast %68 : vector<1x32x32xbf16> to vector<32x32xbf16>
    %cst_71 = arith.constant dense<0.000000e+00> : vector<4x32xf32>
    %70 = tpu.matmul %5, %69, %cst_71 {dimension_numbers = #tpu.dot_dimension_numbers<[1], [0], [0], [1], [0, 0, 1, 1], [], []>} : vector<4x32xbf16>, vector<32x32xbf16>, vector<4x32xf32> -> vector<4x32xf32>
    %c2_72 = arith.constant 2 : index
    %c0_73 = arith.constant 0 : index
    %c0_74 = arith.constant 0 : index
    %71 = vector.load %arg5[%c2_72, %c0_73, %c0_74] : memref<3x4x4xbf16, #tpu.memory_space<vmem>>, vector<1x4x4xbf16>
    %72 = vector.shape_cast %71 : vector<1x4x4xbf16> to vector<4x4xbf16>
    %73 = arith.truncf %70 : vector<4x32xf32> to vector<4x32xbf16>
    %cst_75 = arith.constant dense<0.000000e+00> : vector<4x32xf32>
    %74 = tpu.matmul %72, %73, %cst_75 {dimension_numbers = #tpu.dot_dimension_numbers<[1], [0], [0], [1], [0, 0, 1, 1], [], []>} : vector<4x4xbf16>, vector<4x32xbf16>, vector<4x32xf32> -> vector<4x32xf32>
    %75 = arith.addf %67, %74 : vector<4x32xf32>
    %76 = vector.extract_strided_slice %8 {offsets = [0, 0], sizes = [1, 32], strides = [1, 1]} : vector<2x32xf32> to vector<1x32xf32>
    %77 = vector.broadcast %76 : vector<1x32xf32> to vector<4x32xf32>
    %78 = arith.addf %75, %77 : vector<4x32xf32>
    %79 = arith.truncf %78 : vector<4x32xf32> to vector<4x32xbf16>
    %cst_76 = arith.constant dense<0.000000e+00> : vector<4x128xf32>
    %80 = tpu.matmul %79, %10, %cst_76 {dimension_numbers = #tpu.dot_dimension_numbers<[1], [0], [0], [1], [0, 0, 1, 1], [], []>} : vector<4x32xbf16>, vector<32x128xbf16>, vector<4x128xf32> -> vector<4x128xf32>
    %81 = arith.truncf %80 : vector<4x128xf32> to vector<4x128xbf16>
    %cst_77 = arith.constant dense<0.000000e+00> : vector<16x128xf32>
    %82 = tpu.matmul %9, %81, %cst_77 {dimension_numbers = #tpu.dot_dimension_numbers<[1], [0], [0], [1], [0, 0, 1, 1], [], []>} : vector<16x4xbf16>, vector<4x128xbf16>, vector<16x128xf32> -> vector<16x128xf32>
    %c0_78 = arith.constant 0 : index
    %c0_79 = arith.constant 0 : index
    %c0_80 = arith.constant 0 : index
    %83 = vector.load %arg11[%c0_78, %c0_79, %c0_80] : memref<3x32x32xbf16, #tpu.memory_space<vmem>>, vector<1x32x32xbf16>
    %84 = vector.shape_cast %83 : vector<1x32x32xbf16> to vector<32x32xbf16>
    %cst_81 = arith.constant dense<0.000000e+00> : vector<4x32xf32>
    %85 = tpu.matmul %5, %84, %cst_81 {dimension_numbers = #tpu.dot_dimension_numbers<[1], [0], [0], [1], [0, 0, 1, 1], [], []>} : vector<4x32xbf16>, vector<32x32xbf16>, vector<4x32xf32> -> vector<4x32xf32>
    %c0_82 = arith.constant 0 : index
    %c0_83 = arith.constant 0 : index
    %c0_84 = arith.constant 0 : index
    %86 = vector.load %arg5[%c0_82, %c0_83, %c0_84] : memref<3x4x4xbf16, #tpu.memory_space<vmem>>, vector<1x4x4xbf16>
    %87 = vector.shape_cast %86 : vector<1x4x4xbf16> to vector<4x4xbf16>
    %88 = arith.truncf %85 : vector<4x32xf32> to vector<4x32xbf16>
    %cst_85 = arith.constant dense<0.000000e+00> : vector<4x32xf32>
    %89 = tpu.matmul %87, %88, %cst_85 {dimension_numbers = #tpu.dot_dimension_numbers<[1], [0], [0], [1], [0, 0, 1, 1], [], []>} : vector<4x4xbf16>, vector<4x32xbf16>, vector<4x32xf32> -> vector<4x32xf32>
    %c1_86 = arith.constant 1 : index
    %c0_87 = arith.constant 0 : index
    %c0_88 = arith.constant 0 : index
    %90 = vector.load %arg11[%c1_86, %c0_87, %c0_88] : memref<3x32x32xbf16, #tpu.memory_space<vmem>>, vector<1x32x32xbf16>
    %91 = vector.shape_cast %90 : vector<1x32x32xbf16> to vector<32x32xbf16>
    %cst_89 = arith.constant dense<0.000000e+00> : vector<4x32xf32>
    %92 = tpu.matmul %5, %91, %cst_89 {dimension_numbers = #tpu.dot_dimension_numbers<[1], [0], [0], [1], [0, 0, 1, 1], [], []>} : vector<4x32xbf16>, vector<32x32xbf16>, vector<4x32xf32> -> vector<4x32xf32>
    %93 = arith.addf %89, %92 : vector<4x32xf32>
    %c2_90 = arith.constant 2 : index
    %c0_91 = arith.constant 0 : index
    %c0_92 = arith.constant 0 : index
    %94 = vector.load %arg11[%c2_90, %c0_91, %c0_92] : memref<3x32x32xbf16, #tpu.memory_space<vmem>>, vector<1x32x32xbf16>
    %95 = vector.shape_cast %94 : vector<1x32x32xbf16> to vector<32x32xbf16>
    %cst_93 = arith.constant dense<0.000000e+00> : vector<4x32xf32>
    %96 = tpu.matmul %5, %95, %cst_93 {dimension_numbers = #tpu.dot_dimension_numbers<[1], [0], [0], [1], [0, 0, 1, 1], [], []>} : vector<4x32xbf16>, vector<32x32xbf16>, vector<4x32xf32> -> vector<4x32xf32>
    %c2_94 = arith.constant 2 : index
    %c0_95 = arith.constant 0 : index
    %c0_96 = arith.constant 0 : index
    %97 = vector.load %arg5[%c2_94, %c0_95, %c0_96] : memref<3x4x4xbf16, #tpu.memory_space<vmem>>, vector<1x4x4xbf16>
    %98 = vector.shape_cast %97 : vector<1x4x4xbf16> to vector<4x4xbf16>
    %99 = arith.truncf %96 : vector<4x32xf32> to vector<4x32xbf16>
    %cst_97 = arith.constant dense<0.000000e+00> : vector<4x32xf32>
    %100 = tpu.matmul %98, %99, %cst_97 {dimension_numbers = #tpu.dot_dimension_numbers<[1], [0], [0], [1], [0, 0, 1, 1], [], []>} : vector<4x4xbf16>, vector<4x32xbf16>, vector<4x32xf32> -> vector<4x32xf32>
    %101 = arith.addf %93, %100 : vector<4x32xf32>
    %102 = vector.extract_strided_slice %8 {offsets = [1, 0], sizes = [1, 32], strides = [1, 1]} : vector<2x32xf32> to vector<1x32xf32>
    %103 = vector.broadcast %102 : vector<1x32xf32> to vector<4x32xf32>
    %104 = arith.addf %101, %103 : vector<4x32xf32>
    %cst_98 = arith.constant 0.000000e+00 : f32
    %105 = vector.broadcast %cst_98 : f32 to vector<16x128xf32>
    %106 = arith.subf %105, %82 : vector<16x128xf32>
    %107 = math.exp %106 : vector<16x128xf32>
    %cst_99 = arith.constant 1.000000e+00 : f32
    %108 = vector.broadcast %cst_99 : f32 to vector<16x128xf32>
    %109 = arith.addf %108, %107 : vector<16x128xf32>
    %110 = tpu.reciprocal %109 {approx = true} : vector<16x128xf32> -> vector<16x128xf32>
    %111 = arith.mulf %32, %110 : vector<16x128xf32>
    %cst_100 = arith.constant 0.000000e+00 : f32
    %112 = vector.broadcast %cst_100 : f32 to vector<4x32xf32>
    %113 = arith.subf %112, %104 : vector<4x32xf32>
    %114 = math.exp %113 : vector<4x32xf32>
    %cst_101 = arith.constant 1.000000e+00 : f32
    %115 = vector.broadcast %cst_101 : f32 to vector<4x32xf32>
    %116 = arith.addf %115, %114 : vector<4x32xf32>
    %117 = tpu.reciprocal %116 {approx = true} : vector<4x32xf32> -> vector<4x32xf32>
    %118 = arith.mulf %56, %117 : vector<4x32xf32>
    %119 = arith.truncf %118 : vector<4x32xf32> to vector<4x32xbf16>
    %cst_102 = arith.constant dense<0.000000e+00> : vector<4x128xf32>
    %120 = tpu.matmul %119, %10, %cst_102 {dimension_numbers = #tpu.dot_dimension_numbers<[1], [0], [0], [1], [0, 0, 1, 1], [], []>} : vector<4x32xbf16>, vector<32x128xbf16>, vector<4x128xf32> -> vector<4x128xf32>
    %121 = arith.truncf %120 : vector<4x128xf32> to vector<4x128xbf16>
    %cst_103 = arith.constant dense<0.000000e+00> : vector<16x128xf32>
    %122 = tpu.matmul %9, %121, %cst_103 {dimension_numbers = #tpu.dot_dimension_numbers<[1], [0], [0], [1], [0, 0, 1, 1], [], []>} : vector<16x4xbf16>, vector<4x128xbf16>, vector<16x128xf32> -> vector<16x128xf32>
    %123 = arith.addf %111, %122 : vector<16x128xf32>
    %124 = arith.truncf %123 : vector<16x128xf32> to vector<16x128xbf16>
    %c0_104 = arith.constant 0 : index
    %c0_105 = arith.constant 0 : index
    %c0_106 = arith.constant 0 : index
    %125 = vector.load %arg8[%c0_104, %c0_105, %c0_106] : memref<3x128x128xbf16, #tpu.memory_space<vmem>>, vector<1x128x128xbf16>
    %126 = vector.shape_cast %125 : vector<1x128x128xbf16> to vector<128x128xbf16>
    %cst_107 = arith.constant dense<0.000000e+00> : vector<16x128xf32>
    %127 = tpu.matmul %124, %126, %cst_107 {dimension_numbers = #tpu.dot_dimension_numbers<[1], [0], [0], [1], [0, 0, 1, 1], [], []>} : vector<16x128xbf16>, vector<128x128xbf16>, vector<16x128xf32> -> vector<16x128xf32>
    %c0_108 = arith.constant 0 : index
    %c0_109 = arith.constant 0 : index
    %c0_110 = arith.constant 0 : index
    %128 = vector.load %arg3[%c0_108, %c0_109, %c0_110] : memref<3x16x16xbf16, #tpu.memory_space<vmem>>, vector<1x16x16xbf16>
    %129 = vector.shape_cast %128 : vector<1x16x16xbf16> to vector<16x16xbf16>
    %130 = arith.truncf %127 : vector<16x128xf32> to vector<16x128xbf16>
    %cst_111 = arith.constant dense<0.000000e+00> : vector<16x128xf32>
    %131 = tpu.matmul %129, %130, %cst_111 {dimension_numbers = #tpu.dot_dimension_numbers<[1], [0], [0], [1], [0, 0, 1, 1], [], []>} : vector<16x16xbf16>, vector<16x128xbf16>, vector<16x128xf32> -> vector<16x128xf32>
    %c1_112 = arith.constant 1 : index
    %c0_113 = arith.constant 0 : index
    %c0_114 = arith.constant 0 : index
    %132 = vector.load %arg8[%c1_112, %c0_113, %c0_114] : memref<3x128x128xbf16, #tpu.memory_space<vmem>>, vector<1x128x128xbf16>
    %133 = vector.shape_cast %132 : vector<1x128x128xbf16> to vector<128x128xbf16>
    %cst_115 = arith.constant dense<0.000000e+00> : vector<16x128xf32>
    %134 = tpu.matmul %124, %133, %cst_115 {dimension_numbers = #tpu.dot_dimension_numbers<[1], [0], [0], [1], [0, 0, 1, 1], [], []>} : vector<16x128xbf16>, vector<128x128xbf16>, vector<16x128xf32> -> vector<16x128xf32>
    %135 = arith.addf %131, %134 : vector<16x128xf32>
    %c2_116 = arith.constant 2 : index
    %c0_117 = arith.constant 0 : index
    %c0_118 = arith.constant 0 : index
    %136 = vector.load %arg8[%c2_116, %c0_117, %c0_118] : memref<3x128x128xbf16, #tpu.memory_space<vmem>>, vector<1x128x128xbf16>
    %137 = vector.shape_cast %136 : vector<1x128x128xbf16> to vector<128x128xbf16>
    %cst_119 = arith.constant dense<0.000000e+00> : vector<16x128xf32>
    %138 = tpu.matmul %124, %137, %cst_119 {dimension_numbers = #tpu.dot_dimension_numbers<[1], [0], [0], [1], [0, 0, 1, 1], [], []>} : vector<16x128xbf16>, vector<128x128xbf16>, vector<16x128xf32> -> vector<16x128xf32>
    %c2_120 = arith.constant 2 : index
    %c0_121 = arith.constant 0 : index
    %c0_122 = arith.constant 0 : index
    %139 = vector.load %arg3[%c2_120, %c0_121, %c0_122] : memref<3x16x16xbf16, #tpu.memory_space<vmem>>, vector<1x16x16xbf16>
    %140 = vector.shape_cast %139 : vector<1x16x16xbf16> to vector<16x16xbf16>
    %141 = arith.truncf %138 : vector<16x128xf32> to vector<16x128xbf16>
    %cst_123 = arith.constant dense<0.000000e+00> : vector<16x128xf32>
    %142 = tpu.matmul %140, %141, %cst_123 {dimension_numbers = #tpu.dot_dimension_numbers<[1], [0], [0], [1], [0, 0, 1, 1], [], []>} : vector<16x16xbf16>, vector<16x128xbf16>, vector<16x128xf32> -> vector<16x128xf32>
    %143 = arith.addf %135, %142 : vector<16x128xf32>
    %144 = vector.extract_strided_slice %6 {offsets = [1, 0], sizes = [1, 128], strides = [1, 1]} : vector<2x128xf32> to vector<1x128xf32>
    %145 = vector.broadcast %144 : vector<1x128xf32> to vector<16x128xf32>
    %146 = arith.addf %143, %145 : vector<16x128xf32>
    %cst_124 = arith.constant 0.000000e+00 : f32
    %147 = vector.broadcast %cst_124 : f32 to vector<16x128xf32>
    %148 = arith.maximumf %146, %147 : vector<16x128xf32>
    %c0_125 = arith.constant 0 : index
    %c0_126 = arith.constant 0 : index
    %c0_127 = arith.constant 0 : index
    %149 = vector.load %arg16[%c0_125, %c0_126, %c0_127] : memref<1x16x128xf32, #tpu.memory_space<vmem>>, vector<1x16x128xf32>
    %150 = vector.shape_cast %149 : vector<1x16x128xf32> to vector<16x128xf32>
    %151 = vector.shape_cast %148 : vector<16x128xf32> to vector<1x16x128xf32>
    tpu.vector_store %arg16[%c0_125, %c0_126, %c0_127], %151 {strides = array<i32>} : memref<1x16x128xf32, #tpu.memory_space<vmem>>, vector<1x16x128xf32>,
    return
  }
  func.func @transform_0(%arg0: i32) -> (i32, i32, i32) {
    %c0_i32 = arith.constant 0 : i32
    %c0_i32_0 = arith.constant 0 : i32
    %c0_i32_1 = arith.constant 0 : i32
    return %arg0, %c0_i32, %c0_i32_0 : i32, i32, i32
  }
  func.func @transform_1(%arg0: i32) -> (i32, i32, i32) {
    %c0_i32 = arith.constant 0 : i32
    %c0_i32_0 = arith.constant 0 : i32
    %c0_i32_1 = arith.constant 0 : i32
    return %arg0, %c0_i32, %c0_i32_0 : i32, i32, i32
  }
  func.func @transform_2(%arg0: i32) -> (i32, i32, i32) {
    %c0_i32 = arith.constant 0 : i32
    %c0_i32_0 = arith.constant 0 : i32
    %c0_i32_1 = arith.constant 0 : i32
    %c0_i32_2 = arith.constant 0 : i32
    return %c0_i32, %c0_i32_0, %c0_i32_1 : i32, i32, i32
  }
  func.func @transform_3(%arg0: i32) -> (i32, i32, i32) {
    %c0_i32 = arith.constant 0 : i32
    %c0_i32_0 = arith.constant 0 : i32
    %c0_i32_1 = arith.constant 0 : i32
    %c0_i32_2 = arith.constant 0 : i32
    return %c0_i32, %c0_i32_0, %c0_i32_1 : i32, i32, i32
  }
  func.func @transform_4(%arg0: i32) -> (i32, i32, i32) {
    %c0_i32 = arith.constant 0 : i32
    %c0_i32_0 = arith.constant 0 : i32
    %c0_i32_1 = arith.constant 0 : i32
    %c0_i32_2 = arith.constant 0 : i32
    return %c0_i32, %c0_i32_0, %c0_i32_1 : i32, i32, i32
  }
  func.func @transform_5(%arg0: i32) -> (i32, i32) {
    %c0_i32 = arith.constant 0 : i32
    %c0_i32_0 = arith.constant 0 : i32
    %c0_i32_1 = arith.constant 0 : i32
    return %c0_i32, %c0_i32_0 : i32, i32
  }
  func.func @transform_6(%arg0: i32) -> (i32, i32, i32) {
    %c0_i32 = arith.constant 0 : i32
    %c0_i32_0 = arith.constant 0 : i32
    %c0_i32_1 = arith.constant 0 : i32
    %c0_i32_2 = arith.constant 0 : i32
    return %c0_i32, %c0_i32_0, %c0_i32_1 : i32, i32, i32
  }
  func.func @transform_7(%arg0: i32) -> (i32, i32, i32) {
    %c0_i32 = arith.constant 0 : i32
    %c0_i32_0 = arith.constant 0 : i32
    %c0_i32_1 = arith.constant 0 : i32
    %c0_i32_2 = arith.constant 0 : i32
    return %c0_i32, %c0_i32_0, %c0_i32_1 : i32, i32, i32
  }
  func.func @transform_8(%arg0: i32) -> (i32, i32, i32) {
    %c0_i32 = arith.constant 0 : i32
    %c0_i32_0 = arith.constant 0 : i32
    %c0_i32_1 = arith.constant 0 : i32
    %c0_i32_2 = arith.constant 0 : i32
    return %c0_i32, %c0_i32_0, %c0_i32_1 : i32, i32, i32
  }
  func.func @transform_9(%arg0: i32) -> (i32, i32, i32) {
    %c0_i32 = arith.constant 0 : i32
    %c0_i32_0 = arith.constant 0 : i32
    %c0_i32_1 = arith.constant 0 : i32
    %c0_i32_2 = arith.constant 0 : i32
    return %c0_i32, %c0_i32_0, %c0_i32_1 : i32, i32, i32
  }
  func.func @transform_10(%arg0: i32) -> (i32, i32, i32) {
    %c0_i32 = arith.constant 0 : i32
    %c0_i32_0 = arith.constant 0 : i32
    %c0_i32_1 = arith.constant 0 : i32
    %c0_i32_2 = arith.constant 0 : i32
    return %c0_i32, %c0_i32_0, %c0_i32_1 : i32, i32, i32
  }
  func.func @transform_11(%arg0: i32) -> (i32, i32) {
    %c0_i32 = arith.constant 0 : i32
    %c0_i32_0 = arith.constant 0 : i32
    %c0_i32_1 = arith.constant 0 : i32
    return %c0_i32, %c0_i32_0 : i32, i32
  }
  func.func @transform_12(%arg0: i32) -> (i32, i32) {
    %c0_i32 = arith.constant 0 : i32
    %c0_i32_0 = arith.constant 0 : i32
    %c0_i32_1 = arith.constant 0 : i32
    return %c0_i32, %c0_i32_0 : i32, i32
  }
  func.func @transform_13(%arg0: i32) -> (i32, i32) {
    %c0_i32 = arith.constant 0 : i32
    %c0_i32_0 = arith.constant 0 : i32
    %c0_i32_1 = arith.constant 0 : i32
    return %c0_i32, %c0_i32_0 : i32, i32
  }
  func.func @transform_14(%arg0: i32) -> (i32, i32) {
    %c0_i32 = arith.constant 0 : i32
    %c0_i32_0 = arith.constant 0 : i32
    %c0_i32_1 = arith.constant 0 : i32
    return %c0_i32, %c0_i32_0 : i32, i32
  }
  func.func @transform_15(%arg0: i32) -> (i32, i32, i32) {
    %c0_i32 = arith.constant 0 : i32
    %c0_i32_0 = arith.constant 0 : i32
    %c0_i32_1 = arith.constant 0 : i32
    return %arg0, %c0_i32, %c0_i32_0 : i32, i32, i32
  }
}

</mosaic_0001>

<bundles_post_ra>
// kernel: tpu_custom_call.1
= control target key start
LH: loop header
LB: loop body
LE: loop exit
PB: predicated region body
PF: predicated region fallthrough
CT: control target
= control target key end

     0   :  { %s4799_s0 = inlined_call_operand.vmem [shape: f32[2,16,128], index: 0, kind: input, shape index: {}]   ;;  %s4800_s1 = inlined_call_operand.hbm [shape: f32[2,4,32], index: 1, kind: input, shape index: {}]   ;;  %s4801_s2 = inlined_call_operand.hbm [shape: bf16[3,16,16], index: 2, kind: input, shape index: {}]   ;;  %s4802_s3 = inlined_call_operand.hbm [shape: bf16[3,4,16], index: 3, kind: input, shape index: {}]   ;;  %s4803_s4 = inlined_call_operand.hbm [shape: bf16[3,4,4], index: 4, kind: input, shape index: {}]   ;;  %s4804_s5 = inlined_call_operand.vmem [shape: bf16[16,4], index: 5, kind: input, shape index: {}]   ;;  %s4805_s6 = inlined_call_operand.vmem [shape: bf16[3,128,128], index: 6, kind: input, shape index: {}]   ;;  %s4806_s7 = inlined_call_operand.hbm [shape: bf16[3,128,128], index: 7, kind: input, shape index: {}]   ;;  %s4807_s8 = inlined_call_operand.vmem [shape: bf16[3,128,32], index: 8, kind: input, shape index: {}]   ;;  %s4808_s9 = inlined_call_operand.vmem [shape: bf16[3,32,32], index: 9, kind: input, shape index: {}]   ;;  %s4809_s10 = inlined_call_operand.hbm [shape: bf16[3,32,32], index: 10, kind: input, shape index: {}]   ;;  %s4810_s11 = inlined_call_operand.vmem [shape: bf16[32,128], index: 11, kind: input, shape index: {}]   ;;  %s4811_s12 = inlined_call_operand.vmem [shape: f32[2,128], index: 12, kind: input, shape index: {}]   ;;  %s4812_s13 = inlined_call_operand.vmem [shape: f32[4,32], index: 13, kind: input, shape index: {}]   ;;  %s4813_s14 = inlined_call_operand.vmem [shape: f32[2,32], index: 14, kind: input, shape index: {}]   ;;  %s4814_s15 = inlined_call_operand.hbm [shape: f32[2,16,128], index: 15, kind: output, shape index: {}]  }
   0x1   :  { %4825 = sst [smem:[#allocation19_spill]] %s4801_s2 }
   0x2   :  { %4826 = sst [smem:[#allocation20_spill]] %s4804_s5 }
   0x3   :  { %4827 = sst [smem:[#allocation21_spill]] %s4808_s9 }
   0x4   :  { %4828 = sst [smem:[#allocation22_spill]] %s4810_s11 }
   0x5   :  { %4829 = sst [smem:[#allocation23_spill]] %s4811_s12 }
   0x6   :  { %4830 = sst [smem:[#allocation24_spill]] %s4812_s13 }
   0x7   :  { %4831 = sst [smem:[#allocation25_spill]] %s4813_s14 }
   0x8   :  { %4832 = sst [smem:[#allocation26_spill]] %s4814_s15 }
   0x9   :  { %20 = vsyncpa [#allocation3], 0 }
   0xa   :  { %22 = vsyncpa [#allocation3 + $0x1], 0 }
   0xb   :  { %23 = vsyncpa [#allocation6], 0 }
   0xc   :  { %24 = vsyncpa [#allocation9], 0 }
   0xd   :  { %25 = vsyncpa [#allocation12], 0 }
   0xe   :  { %26 = vsyncpa [#allocation4], 0 }
   0xf   :  { %28 = vsyncpa [#allocation4 + $0x1], 0  ;;  %s4040_s18 = smov 0   ;;  %s4042_s19 = smov 0  }
  0x10   :  { %s4044_s20 = smov 0   ;;  %s4046_s21 = smov 0  }
  0x11 LB: > { %s3945_s22 = smov [#allocation5]   ;;  %s4061_s24 = sadd.s32 4294967295, %s3943_s21   ;;  %s3943_s21 = sphi %s4046_s21, %s4864_s21   ;;  %s3939_s20 = sphi %s4044_s20, %s4863_s20   ;;  %s3935_s19 = sphi %s4042_s19, %s4862_s19   ;;  %s3931_s18 = sphi %s4040_s18, %s4861_s18  }
  0x12   : > { %s402_s23 = sshll.u32 %s3945_s22, 4  ;;  %p2828_p0 = scmp.ge.s32.totalorder %s3943_s21, 1  ;;  %s4066_s23 = int_to_ptr.vmem [resolvable:$true] %s402_s23 }
  0x13   : > { %p4820_p1 = scmp.eq.s32.totalorder %s4061_s24, 0  ;;  %p390_p2 = scmp.lt.s32.totalorder %s3943_s21, 3 }
  0x14   : > { %s3946_s27 = smov [#allocation8]   ;;  %s3947_s29 = smov [#allocation7]  }
  0x15   : > { %p4068_p3 = pnand %p2828_p0, %p390_p2  ;;  %s428_s28 = sshll.u32 %s3946_s27, 4  ;;  %s4081_s28 = int_to_ptr.vmem [resolvable:$true] %s428_s28 }
  0x16   : > { %s4083_s30 = sshll.u32 %s3947_s29, 4  ;;  %s4835_s2 = sld [smem:[#allocation19_spill]]  ;;  %s416_s30 = int_to_ptr.vmem [resolvable:$true] %s4083_s30 }
  0x17   : > { %s4833_s25 = scalar_select %p4068_p3, 1, 0 }
  0x18   : > { %p3513_p5 = pneg %p4068_p3 }
  0x1a   : > { %p4077_p6 = pnand %p3513_p5, %p4820_p1 }
  0x1c   : > { %s3695_s22 = scalar_lea.hbm %s4835_s2, 384  ;;  %p4093_p8 = pneg %p4077_p6 }
  0x1d   : > { %p3696_p7 = scmp.ne.s32.totalorder %s4835_s2, %s3695_s22  ;;  %p3702_p11 = scmp.lt.u32.totalorder %s3695_s22, %s4835_s2 }
  0x1f   : > { %p3698_p9 = pnand %p4093_p8, %p3696_p7 }
  0x21   : > { %p3699_p10 = pneg %p3698_p9 }
  0x23   : > { %p3704_p12 = pnand %p3702_p11, %p3699_p10 }
  0x25   : > { %3707 = shalt.err (!%p3704_p12)
}
  0x26   : > { %s3708_s13 = scalar_lea.vmem %s4066_s23, 384  ;;  %p3716_p5 = scmp.lt.s32.totalorder %s4066_s23, %s4066_s23 }
  0x27   : > { %p3709_p13 = scmp.ne.s32.totalorder %s4066_s23, %s3708_s13  ;;  %p3717_p4 = scmp.lt.s32.totalorder %s3708_s13, %s3708_s13 }
  0x29   : > { %p3711_p0 = pnand %p3709_p13, %p4093_p8  ;;  %p3718_p7 = por %p3717_p4, %p3716_p5 }
  0x2b   : > { %p3712_p2 = pneg %p3711_p0 }
  0x2d   : > { %p3719_p9 = pnand %p3718_p7, %p3712_p2 }
  0x2f   : > { %3722 = shalt.err (!%p3719_p9)
}
  0x30   : > { %s4818_s15 = smov 64   ;;  %s4822_s16 = smov 4  }
  0x31   : > { %3516 = dma.hbm_to_vmem [thread:$0]  (!%p4077_p6), %s4835_s2, 384, %s4066_s23, [#allocation6], %s4818_s15, %s4818_s15, %s4822_s16  }
  0x32   : > { %s3723_s13 = scalar_lea.hbm %s4803_s4, 96 }
  0x33   : > { %p3724_p4 = scmp.ne.s32.totalorder %s4803_s4, %s3723_s13  ;;  %p3730_p12 = scmp.lt.u32.totalorder %s3723_s13, %s4803_s4 }
  0x35   : > { %p3726_p10 = pnand %p3724_p4, %p4093_p8 }
  0x37   : > { %p3727_p11 = pneg %p3726_p10 }
  0x39   : > { %p3732_p13 = pnand %p3730_p12, %p3727_p11 }
  0x3b   : > { %3735 = shalt.err (!%p3732_p13)
}
  0x3c   : > { %s3736_s23 = scalar_lea.vmem %s4081_s28, 96  ;;  %p3744_p7 = scmp.lt.s32.totalorder %s4081_s28, %s4081_s28 }
  0x3d   : > { %p3737_p0 = scmp.ne.s32.totalorder %s4081_s28, %s3736_s23  ;;  %p3745_p9 = scmp.lt.s32.totalorder %s3736_s23, %s3736_s23 }
  0x3f   : > { %p3739_p2 = pnand %p3737_p0, %p4093_p8  ;;  %p3746_p4 = por %p3745_p9, %p3744_p7 }
  0x41   : > { %p3740_p5 = pneg %p3739_p2 }
  0x43   : > { %p3747_p10 = pnand %p3746_p4, %p3740_p5 }
  0x45   : > { %3750 = shalt.err (!%p3747_p10)
}
  0x46   : > { %s3950_s5 = smov 32   ;;  %s3951_s9 = smov 2  }
  0x47   : > { %3522 = dma.hbm_to_vmem [thread:$0]  (!%p4077_p6), %s4803_s4, 96, %s4081_s28, [#allocation9], %s3950_s5, %s3950_s5, %s3951_s9  }
  0x48   : > { %s3751_s27 = scalar_lea.hbm %s4802_s3, 96 }
  0x49   : > { %p3752_p11 = scmp.ne.s32.totalorder %s4802_s3, %s3751_s27  ;;  %p3758_p0 = scmp.lt.u32.totalorder %s3751_s27, %s4802_s3 }
  0x4b   : > { %p3754_p12 = pnand %p3752_p11, %p4093_p8 }
  0x4d   : > { %p3755_p13 = pneg %p3754_p12 }
  0x4f   : > { %p3760_p2 = pnand %p3758_p0, %p3755_p13 }
  0x51   : > { %3763 = shalt.err (!%p3760_p2)
}
  0x52   : > { %s3764_s11 = scalar_lea.vmem %s416_s30, 96  ;;  %p3772_p4 = scmp.lt.s32.totalorder %s416_s30, %s416_s30 }
  0x53   : > { %p3765_p5 = scmp.ne.s32.totalorder %s416_s30, %s3764_s11  ;;  %p3773_p10 = scmp.lt.s32.totalorder %s3764_s11, %s3764_s11 }
  0x55   : > { %p3767_p7 = pnand %p3765_p5, %p4093_p8  ;;  %p3774_p1 = por %p3773_p10, %p3772_p4 }
  0x57   : > { %p3768_p9 = pneg %p3767_p7 }
  0x59   : > { %p3775_p3 = pnand %p3774_p1, %p3768_p9 }
  0x5b   : > { %3778 = shalt.err (!%p3775_p3)
}
  0x5c   : > { %3519 = dma.hbm_to_vmem [thread:$0]  (!%p4077_p6), %s4802_s3, 96, %s416_s30, [#allocation6], %s3950_s5, %s3950_s5, %s3951_s9  }
  0x5d   : > { %s3952_s15 = smov [#allocation10]   ;;  %s3953_s22 = smov [#allocation11]  }
  0x5e   : > { %s447_s17 = sshll.u32 %s3952_s15, 4  ;;  %s466_s27 = sshll.u32 %s3953_s22, 4  ;;  %s448_s17 = int_to_ptr.vmem [resolvable:$true] %s447_s17  ;;  %s467_s27 = int_to_ptr.vmem [resolvable:$true] %s466_s27 }
  0x5f   : > { %s3779_s23 = scalar_lea.hbm %s4806_s7, 3072 }
  0x60   : > { %p3780_p1 = scmp.ne.s32.totalorder %s4806_s7, %s3779_s23  ;;  %p3786_p12 = scmp.lt.u32.totalorder %s3779_s23, %s4806_s7 }
  0x62   : > { %p3782_p3 = pnand %p3780_p1, %p4093_p8 }
  0x64   : > { %p3783_p11 = pneg %p3782_p3 }
  0x66   : > { %p3788_p13 = pnand %p3786_p12, %p3783_p11 }
  0x68   : > { %3791 = shalt.err (!%p3788_p13)
}
  0x69   : > { %s3792_s30 = scalar_lea.vmem %s448_s17, 3072  ;;  %p3800_p7 = scmp.lt.s32.totalorder %s448_s17, %s448_s17 }
  0x6a   : > { %p3793_p0 = scmp.ne.s32.totalorder %s448_s17, %s3792_s30  ;;  %p3801_p9 = scmp.lt.s32.totalorder %s3792_s30, %s3792_s30 }
  0x6c   : > { %p3795_p2 = pnand %p3793_p0, %p4093_p8  ;;  %p3802_p4 = por %p3801_p9, %p3800_p7 }
  0x6e   : > { %p3796_p5 = pneg %p3795_p2 }
  0x70   : > { %p3803_p10 = pnand %p3802_p4, %p3796_p5 }
  0x72   : > { %3806 = shalt.err (!%p3803_p10)
}
  0x73   : > { %s4837_s16 = smov 4   ;;  %s4838_s5 = smov 64  }
  0x74   : > { %3525 = dma.hbm_to_vmem [thread:$0]  (!%p4077_p6), %s4806_s7, 3072, %s448_s17, [#allocation9], %s4838_s5, %s4838_s5, %s4837_s16  }
  0x75   : > { %s3807_s22 = scalar_lea.hbm %s4809_s10, 768 }
  0x76   : > { %p3808_p1 = scmp.ne.s32.totalorder %s4809_s10, %s3807_s22  ;;  %p3814_p12 = scmp.lt.u32.totalorder %s3807_s22, %s4809_s10 }
  0x78   : > { %p3810_p3 = pnand %p3808_p1, %p4093_p8 }
  0x7a   : > { %p3811_p11 = pneg %p3810_p3 }
  0x7c   : > { %p3816_p13 = pnand %p3814_p12, %p3811_p11 }
  0x7e   : > { %3819 = shalt.err (!%p3816_p13)
}
  0x7f   : > { %s3820_s28 = scalar_lea.vmem %s467_s27, 768  ;;  %p3828_p7 = scmp.lt.s32.totalorder %s467_s27, %s467_s27 }
  0x80   : > { %p3821_p0 = scmp.ne.s32.totalorder %s467_s27, %s3820_s28  ;;  %p3829_p9 = scmp.lt.s32.totalorder %s3820_s28, %s3820_s28 }
  0x82   : > { %p3823_p2 = pnand %p3821_p0, %p4093_p8  ;;  %p3830_p4 = por %p3829_p9, %p3828_p7 }
  0x84   : > { %p3824_p5 = pneg %p3823_p2 }
  0x86   : > { %p3831_p10 = pnand %p3830_p4, %p3824_p5 }
  0x88   : > { %3834 = shalt.err (!%p3831_p10)
}
  0x89   : > { %3528 = dma.hbm_to_vmem [thread:$0]  (!%p4077_p6), %s4809_s10, 768, %s467_s27, [#allocation12], %s4838_s5, %s4838_s5, %s4837_s16  }
  0x8a   : > { %s2827_s12 = sadd.s32 4294967294, %s3943_s21   ;;  %s4203_s26 = sadd.s32 1, %s3943_s21  }
  0x8b   : > { %s67_s2 = sadd.s32 1, %s3939_s20  ;;  %s64_s9 = ssub.s32 %s3943_s21, %s4203_s26 }
  0x8c   : > { %p74_p8 = scmp.ne.s32.totalorder %s3939_s20, %s3935_s19  ;;  %p65_p1 = scmp.eq.s32.totalorder %s64_s9, 0 }
  0x8d   : > { %p75_p3 = scmp.eq.s32.totalorder %s3943_s21, 0  ;;  %p80_p11 = scmp.ne.s32.totalorder %s3935_s19, %s3931_s18 }
  0x8e   : > { %p377_p12 = scmp.eq.s32.totalorder %s4061_s24, 1  ;;  %p4839_p0 = scmp.eq.s32.totalorder %s4061_s24, 0 }
  0x8f   : > { %s4215_s14 = scalar_select %p65_p1, %s3939_s20, %s67_s2  }
  0x90   : > { %p76_p13 = por %p75_p3, %p74_p8  ;;  %p4219_p2 = por %p4839_p0, %p80_p11 }
  0x91   : > { %p4223_p6 = por %p377_p12, %p74_p8  ;;  %p383_p5 = scmp.eq.s32.totalorder %s2827_s12, 1 }
  0x92   : > { %p3542_p7 = scmp.lt.s32.totalorder %s3943_s21, 2  ;;  %s500_s16 = sand.u32 1, %s3939_s20  }
  0x93   : > { %s4841_s27 = scalar_select %p4223_p6, 1, 0 }
  0x94   : > { %p4229_p9 = por %p383_p5, %p80_p11  ;;  %s2835_s22 = sshll.u32 %s500_s16, 2 }
  0x95   : > { %s2836_s29 = sshll.u32 %s3943_s21, 6  ;;  %s504_s28 = scalar_lea.vmem [#allocation2], %s2835_s22 }
  0x96   : > { %s4842_s5 = scalar_select %p4229_p9, 1, 0 }
  0x97   : > { %s4237_s11 = scalar_lea.hbm %s4800_s1, %s2836_s29  ;;  %s511_s17 = sshll.u32 %s504_s28, 4  ;;  %s4243_s17 = int_to_ptr.vmem [resolvable:$true] %s511_s17 }
  0x98   : > { %p4239_p4 = pnand %p3542_p7, %p76_p13  ;;  %s501_s12 = scalar_lea.sflag [#allocation3], %s500_s16 }
  0x99   : > { %s3835_s2 = scalar_lea.hbm %s4237_s11, 64  ;;  %s3840_s29 = scalar_lea.hbm %s4800_s1, 128 }
  0x9a   : > { %p3836_p10 = scmp.ne.s32.totalorder %s4237_s11, %s3835_s2  ;;  %p3837_p8 = pneg %p4239_p4 }
  0x9b   : > { %p3841_p11 = scmp.lt.u32.totalorder %s4237_s11, %s4800_s1  ;;  %p3842_p12 = scmp.lt.u32.totalorder %s3840_s29, %s3835_s2 }
  0x9c   : > { %p3838_p1 = pnand %p3837_p8, %p3836_p10  ;;  %p3844_p0 = scmp.lt.u32.totalorder %s3835_s2, %s4237_s11 }
  0x9d   : > { %p3843_p13 = por %p3842_p12, %p3841_p11 }
  0x9e   : > { %p3839_p3 = pneg %p3838_p1 }
  0x9f   : > { %p3845_p5 = por %p3844_p0, %p3843_p13 }
  0xa1   : > { %p3846_p7 = pnand %p3845_p5, %p3839_p3 }
  0xa3   : > { %3849 = shalt.err (!%p3846_p7)
}
  0xa4   : > { %s3850_s16 = scalar_lea.vmem %s4243_s17, 64  ;;  %s3954_s28 = smov [#allocation2]  }
  0xa5   : > { %p3851_p10 = scmp.ne.s32.totalorder %s4243_s17, %s3850_s16  ;;  %s3855_s9 = sshll.u32 %s3954_s28, 4  ;;  %s3856_s9 = int_to_ptr.vmem [resolvable:$false] %s3855_s9 }
  0xa6   : > { %s3857_s22 = scalar_lea.vmem %s3856_s9, 128  ;;  %p3858_p6 = scmp.lt.s32.totalorder %s4243_s17, %s3856_s9 }
  0xa7   : > { %p3853_p1 = pnand %p3851_p10, %p3837_p8  ;;  %p3859_p11 = scmp.lt.s32.totalorder %s3857_s22, %s3850_s16 }
  0xa9   : > { %p3854_p9 = pneg %p3853_p1  ;;  %p3860_p12 = por %p3859_p11, %p3858_p6 }
  0xab   : > { %p3861_p13 = pnand %p3860_p12, %p3854_p9 }
  0xad   : > { %3864 = shalt.err (!%p3861_p13)
}
  0xae   : > { %3532 = dma.hbm_to_vmem [thread:$0]  (!%p4239_p4), %s4237_s11, 64, %s4243_s17, %s501_s12  }
  0xaf   : > { %p4844_p3 = scmp.ne.s32.totalorder %s4833_s25, 0 }
  0xb0   : > { %s4273_s2 = sand.u32 (!%p4844_p3), 1, %s3935_s19  }
  0xb1   : > { %520 = sbr.rel (%p4844_p3) target bundleno = 3274 (0xcca), region = 80  ;;  %s2838_s29 = sshll.u32 (!%p4844_p3), %s4273_s2, 2 }
  0xb2   : > { %s523_s13 = scalar_lea.sflag (!%p4844_p3), [#allocation3], %s4273_s2  ;;  %s4277_s23 = scalar_lea.vmem (!%p4844_p3), [#allocation2], %s2838_s29 }
  0xb8   : > { %3910 = dma.done.wait (%p4219_p2), %s523_s13, 64  }
  0xb9   : > { %3912 = vsyncadd (%p4219_p2), %s523_s13, 4294967232  ;;  %p4845_p6 = scmp.eq.s32.totalorder %s4061_s24, 0 }
  0xbb   : > { %3914 = dma.done.wait (%p4845_p6), [#allocation6], 480   ;;  %p4846_p9 = pmov %p4845_p6 }
  0xbc   : > { %p4847_p4 = pmov %p4845_p6 }
  0xbd   : > { %3916 = vsyncadd (%p4846_p9), [#allocation6], 4294966816 }
  0xbe   : > { %3918 = dma.done.wait (%p4847_p4), [#allocation9], 3168   ;;  %p4848_p8 = pmov %p4847_p4 }
  0xbf   : > { %p4849_p0 = pmov %p4847_p4 }
  0xc0   : > { %3920 = vsyncadd (%p4848_p8), [#allocation9], 4294964128 }
  0xc1   : > { %3922 = dma.done.wait (%p4849_p0), [#allocation12], 768   ;;  %p4850_p5 = pmov %p4849_p0 }
  0xc2   : > { %v3955_v0 = vmov 0.0   ;;  %vm3956_vm0 = vmmov 0   ;;  %v3594_v1 = vld [vmem:[%s4805_s6] sm:$0xff]   ;;  %v3595_v2 = vld [vmem:[%s4805_s6 + $0x8] sm:$0xff]   ;;  %v3596_v3 = vld [vmem:[%s4805_s6 + $0x10] sm:$0xff]   ;;  %p598_p2 = scmp.lt.s32.totalorder %s4061_s24, 1 }
  0xc3   : > { %3924 = vsyncadd (%p4850_p5), [#allocation12], 4294966528  ;;  %3167 = vmatprep.subr.bf16.mxu0 %v3955_v0  ;;  %3183 = vmatprep.mubr.msk.bf16.mxu0 %vm3956_vm0, %v3955_v0  ;;  %v3602_v4 = vld [vmem:[%s4805_s6 + $0x40] sm:$0xff]   ;;  %v3597_v5 = vld [vmem:[%s4805_s6 + $0x18] sm:$0xff]   ;;  %vm837_vm1 = vcmask 130048   ;;  %s4851_s9 = sld [smem:[#allocation21_spill]] }
  0xc4   : > { %3187 = vmatprep.subr.bf16.mxu1 %v3955_v0  ;;  %3203 = vmatprep.mubr.msk.bf16.mxu1 %vm3956_vm0, %v3955_v0  ;;  %v3603_v6 = vld [vmem:[%s4805_s6 + $0x48] sm:$0xff]   ;;  %s599_s25 = scalar_select %p598_p2, %s4061_s24, 1  ;;  %v3598_v7 = vld [vmem:[%s4805_s6 + $0x20] sm:$0xff]   ;;  %v3604_v8 = vld [vmem:[%s4805_s6 + $0x50] sm:$0xff]   ;;  %vm1521_vm2 = vcmask 261120   ;;  %vm1628_vm3 = vcmask 1041408  }
  0xc5   : > { %3168 = vmatpush3.bf16.msra.mxu0 %v3594_v1  ;;  %3188 = vmatpush3.bf16.msra.mxu1 %v3602_v4  ;;  %v3599_v9 = vld [vmem:[%s4805_s6 + $0x28] sm:$0xff]   ;;  %v3605_v10 = vld [vmem:[%s4805_s6 + $0x58] sm:$0xff]   ;;  %v3600_v11 = vld [vmem:[%s4805_s6 + $0x30] sm:$0xff]   ;;  %vm1624_vm4 = vcmask 31744   ;;  %s4852_s22 = sld [smem:[#allocation22_spill]]  ;;  %s4853_s15 = sld [smem:[#allocation25_spill]] }
  0xc6   : > { %3169 = vmatprep.subr.bf16.mxu0 %v3955_v0  ;;  %3189 = vmatprep.subr.bf16.mxu1 %v3955_v0  ;;  %s3034_s28 = sshll.u32 %s599_s25, 4  ;;  %v3606_v12 = vld [vmem:[%s4805_s6 + $0x60] sm:$0xff]   ;;  %v3601_v13 = vld [vmem:[%s4805_s6 + $0x38] sm:$0xff]   ;;  %v3607_v16 = vld [vmem:[%s4805_s6 + $0x68] sm:$0xff]   ;;  %s4854_s17 = sld [smem:[#allocation20_spill]] }
  0xc7   : > { %s602_s25 = scalar_lea.vmem %s4799_s0, %s3034_s28  ;;  %v3608_v18 = vld [vmem:[%s4805_s6 + $0x70] sm:$0xff]   ;;  %v3609_v19 = vld [vmem:[%s4805_s6 + $0x78] sm:$0xff]   ;;  %v4378_v25 = vld [vmem:[#allocation5] sm:$0xff]   ;;  %s4855_s16 = sld [smem:[#allocation23_spill]] }
  0xc8   : > { %v604_v14 = vld [vmem:[%s602_s25] sm:$0xff]  ;;  %v605_v15 = vld [vmem:[%s602_s25 + $0x8] sm:$0xff]  ;;  %v3613_v32 = vld [vmem:[%s4805_s6 + $0x90] sm:$0xff]   ;;  %s4856_s29 = sld [smem:[#allocation24_spill]]  ;;  %s2844_s13 = sshll.u32 %s4273_s2, 4 }
  0xc9   : > { %3170 = vmatpush3.bf16.msra.mxu0 %v3595_v2  ;;  %3190 = vmatpush3.bf16.msra.mxu1 %v3603_v6  ;;  %v4360_v17 = vpack.c.bf16 %v605_v15, %v604_v14  ;;  %v3611_v26 = vld [vmem:[%s4805_s6 + $0x80] sm:$0xff]   ;;  %v3612_v27 = vld [vmem:[%s4805_s6 + $0x88] sm:$0xff]   ;;  %v3614_v33 = vld [vmem:[%s4805_s6 + $0x98] sm:$0xff]   ;;  %s3035_s25 = sshll.u32 %s4061_s24, 8  ;;  %s4857_s12 = sld [smem:[#allocation26_spill]] }
  0xca   : > { %3171 = vmatprep.subr.bf16.mxu0 %v3955_v0  ;;  %3191 = vmatprep.subr.bf16.mxu1 %v3955_v0  ;;  %v3615_v34 = vld [vmem:[%s4805_s6 + $0xa0] sm:$0xff]   ;;  %v3616_v35 = vld [vmem:[%s4805_s6 + $0xa8] sm:$0xff]   ;;  %v3617_v36 = vld [vmem:[%s4805_s6 + $0xb0] sm:$0xff]   ;;  %s2681_s28 = scalar_lea.sflag [#allocation4], %s4273_s2  ;;  %p4858_p10 = scmp.ne.s32.totalorder %s4841_s27, 0 }
  0xcb   : > { %v3618_v37 = vld [vmem:[%s4805_s6 + $0xb8] sm:$0xff]   ;;  %v3619_v38 = vld [vmem:[%s4807_s8 + $0x40] sm:$0xff]   ;;  %v3620_v39 = vld [vmem:[%s4807_s8 + $0x48] sm:$0xff]   ;;  %s3957_s24 = smov [#allocation13]  }
  0xcc   : > { %v3621_v40 = vld [vmem:[%s4807_s8 + $0x50] sm:$0xff]   ;;  %v3624_v41 = vld [vmem:[%s4807_s8 + $0x58] sm:$0xff]   ;;  %v3626_v42 = vld [vmem:[%s4807_s8 + $0x60] sm:$0xff]  }
  0xcd   : > { %3172 = vmatpush3.bf16.msra.mxu0 %v3596_v3  ;;  %3192 = vmatpush3.bf16.msra.mxu1 %v3604_v8  ;;  %v3628_v43 = vld [vmem:[%s4807_s8 + $0x68] sm:$0xff]   ;;  %v3630_v44 = vld [vmem:[%s4807_s8 + $0x70] sm:$0xff]   ;;  %v3632_v45 = vld [vmem:[%s4807_s8 + $0x78] sm:$0xff]  }
  0xce   : > { %3173 = vmatprep.subr.bf16.mxu0 %v3955_v0  ;;  %3193 = vmatprep.subr.bf16.mxu1 %v3955_v0  ;;  %v4455_v57 = vld [vmem:[#allocation5 + $0x10] sm:$0xff]   ;;  %v3623_v58 = vld [vmem:[%s4807_s8] sm:$0xff]   ;;  %v3625_v59 = vld [vmem:[%s4807_s8 + $0x8] sm:$0xff]  }
  0xcf   : > { %v3627_v60 = vld [vmem:[%s4807_s8 + $0x10] sm:$0xff]   ;;  %v3629_v61 = vld [vmem:[%s4807_s8 + $0x18] sm:$0xff]   ;;  %v3631_v62 = vld [vmem:[%s4807_s8 + $0x20] sm:$0xff]  }
  0xd0   : > { %v3633_v63 = vld [vmem:[%s4807_s8 + $0x28] sm:$0xff]   ;;  %v3634_v1 = vld [vmem:[%s4807_s8 + $0x30] sm:$0xff]   ;;  %v3635_v2 = vld [vmem:[%s4807_s8 + $0x38] sm:$0xff]  }
  0xd1   : > { %3174 = vmatpush3.bf16.msra.mxu0 %v3597_v5  ;;  %3194 = vmatpush3.bf16.msra.mxu1 %v3605_v10  ;;  %v1263_v8 = vld [vmem:[#allocation7 + $0x2] sm:$0x3] }
  0xd2   : > { %3175 = vmatprep.subr.bf16.mxu0 %v3955_v0  ;;  %3195 = vmatprep.subr.bf16.mxu1 %v3955_v0 }
  0xd5   : > { %3176 = vmatpush3.bf16.msra.mxu0 %v3598_v7  ;;  %3196 = vmatpush3.bf16.msra.mxu1 %v3606_v12 }
  0xd6   : > { %3177 = vmatprep.subr.bf16.mxu0 %v3955_v0  ;;  %3197 = vmatprep.subr.bf16.mxu1 %v3955_v0 }
  0xd9   : > { %3178 = vmatpush3.bf16.msra.mxu0 %v3599_v9  ;;  %3198 = vmatpush3.bf16.msra.mxu1 %v3607_v16 }
  0xda   : > { %3179 = vmatprep.subr.bf16.mxu0 %v3955_v0  ;;  %3199 = vmatprep.subr.bf16.mxu1 %v3955_v0 }
  0xdd   : > { %3180 = vmatpush3.bf16.msra.mxu0 %v3600_v11  ;;  %3200 = vmatpush3.bf16.msra.mxu1 %v3608_v18 }
  0xde   : > { %3181 = vmatprep.subr.bf16.mxu0 %v3955_v0  ;;  %3201 = vmatprep.subr.bf16.mxu1 %v3955_v0 }
  0xe1   : > { %3182 = vmatpush3.bf16.msra.mxu0 %v3601_v13  ;;  %3202 = vmatpush3.bf16.msra.mxu1 %v3609_v19 }
  0xe2   : > { %3233 = vmatprep.subr.bf16.mxu0 %v3955_v0  ;;  %3207 = vmatprep.subr.bf16.mxu1 %v3955_v0 }
  0xe4   : > { %3184 = vmatmul.mubr.bf16.vlgmr.msra.gmra.mrb[0].mxu0 %v4360_v17  ;;  %3204 = vmatmul.mubr.bf16.vlgmr.msra.gmra.mrb[0].mxu1 %v4360_v17 }
  0xe5   : > { %3235 = vmatprep.mubr.msk.bf16.mxu0 %vm3956_vm0, %v3955_v0  ;;  %3209 = vmatprep.mubr.msk.bf16.mxu1 %vm3956_vm0, %v3955_v0 }
 0x1b7   : > { %v716_v20 = vpop.f32.mrb[0].mxu0  ;;  %v825_v28 = vpop.f32.mrb[0].mxu1 }
 0x1b8   : > { %v3185_v21 = vpop.f32.mrb[1].mxu0  ;;  %v3205_v29 = vpop.f32.mrb[1].mxu1 }
 0x1b9   : > { %v719_v22 = vpop.f32.mrb[2].mxu0  ;;  %v828_v30 = vpop.f32.mrb[2].mxu1  ;;  %v1154_v21 = vld [vmem:[#allocation7] sm:$0x3]  ;;  %v3642_v29 = vld [vmem:[%s4807_s8 + $0xb0] sm:$0xff]  }
 0x1ba   : > { %v725_v23 = vpack.c.bf16 %v719_v22, %v716_v20  ;;  %v3186_v24 = vpop.f32.mrb[3].mxu0  ;;  %v3206_v31 = vpop.f32.mrb[3].mxu1  ;;  %v3636_v22 = vld [vmem:[%s4807_s8 + $0x80] sm:$0xff]  }
 0x1bb   : > { %v3638_v24 = vld [vmem:[%s4807_s8 + $0x90] sm:$0xff]  }
 0x1bc   : > { %3208 = vmatpush3.bf16.msra.mxu1 %v725_v23  ;;  %v3637_v23 = vld [vmem:[%s4807_s8 + $0x88] sm:$0xff]  }
 0x1bd   : > { %3213 = vmatprep.subr.bf16.mxu1 %v3955_v0 }
 0x1bf   : > { %3210 = vmatmul.mubr.msk.bf16.vlgmr.msra.gmra.mrb[4].mxu1 %vm837_vm1, %v4378_v25 }
 0x1c0   : > { %3214 = vmatpush3.bf16.msra.mxu1 %v3611_v26  ;;  %3229 = vmatprep.mubr.msk.bf16.mxu1 %vm3956_vm0, %v3955_v0  ;;  %v3639_v26 = vld [vmem:[%s4807_s8 + $0x98] sm:$0xff]  }
 0x1c1   : > { %3215 = vmatprep.subr.bf16.mxu1 %v3955_v0 }
 0x1c4   : > { %3216 = vmatpush3.bf16.msra.mxu1 %v3612_v27  ;;  %v3640_v27 = vld [vmem:[%s4807_s8 + $0xa0] sm:$0xff]  }
 0x1c5   : > { %3217 = vmatprep.subr.bf16.mxu1 %v3955_v0 }
 0x1c8   : > { %3218 = vmatpush3.bf16.msra.mxu1 %v3613_v32 }
 0x1c9   : > { %3219 = vmatprep.subr.bf16.mxu1 %v3955_v0 }
 0x1cc   : > { %3220 = vmatpush3.bf16.msra.mxu1 %v3614_v33 }
 0x1cd   : > { %3221 = vmatprep.subr.bf16.mxu1 %v3955_v0 }
 0x1d0   : > { %3222 = vmatpush3.bf16.msra.mxu1 %v3615_v34 }
 0x1d1   : > { %3223 = vmatprep.subr.bf16.mxu1 %v3955_v0 }
 0x1d4   : > { %3224 = vmatpush3.bf16.msra.mxu1 %v3616_v35  ;;  %v3646_v35 = vld [vmem:[%s4851_s9 + $0x20] sm:$0xff]  }
 0x1d5   : > { %3225 = vmatprep.subr.bf16.mxu1 %v3955_v0 }
 0x1d8   : > { %3226 = vmatpush3.bf16.msra.mxu1 %v3617_v36  ;;  %v607_v36 = vld [vmem:[%s4277_s23] sm:$0xf] }
 0x1d9   : > { %3227 = vmatprep.subr.bf16.mxu1 %v3955_v0 }
 0x1dc   : > { %3228 = vmatpush3.bf16.msra.mxu1 %v3618_v37  ;;  %v3647_v37 = vld [vmem:[%s4851_s9 + $0x28] sm:$0xff]  }
 0x1dd   : > { %3259 = vmatprep.subr.bf16.mxu1 %v3955_v0 }
 0x1df   : > { %3230 = vmatmul.mubr.bf16.vlgmr.msra.gmra.mrb[8].mxu1 %v4360_v17 }
 0x1e0   : > { %3275 = vmatprep.mubr.msk.bf16.mxu1 %vm3956_vm0, %v3955_v0  ;;  %3260 = vmatpush3.bf16.msra.mxu1 %v3619_v38 }
 0x1e1   : > { %3261 = vmatprep.subr.bf16.mxu1 %v3955_v0 }
 0x1e4   : > { %3262 = vmatpush3.bf16.msra.mxu1 %v3620_v39 }
 0x1e5   : > { %3263 = vmatprep.subr.bf16.mxu1 %v3955_v0 }
 0x1e8   : > { %3264 = vmatpush3.bf16.msra.mxu1 %v3621_v40 }
 0x1e9   : > { %3265 = vmatprep.subr.bf16.mxu1 %v3955_v0 }
 0x1ec   : > { %3266 = vmatpush3.bf16.msra.mxu1 %v3624_v41 }
 0x1ed   : > { %3267 = vmatprep.subr.bf16.mxu1 %v3955_v0 }
 0x1f0   : > { %3268 = vmatpush3.bf16.msra.mxu1 %v3626_v42 }
 0x1f1   : > { %3269 = vmatprep.subr.bf16.mxu1 %v3955_v0 }
 0x1f4   : > { %3270 = vmatpush3.bf16.msra.mxu1 %v3628_v43 }
 0x1f5   : > { %3271 = vmatprep.subr.bf16.mxu1 %v3955_v0 }
 0x1f8   : > { %3272 = vmatpush3.bf16.msra.mxu1 %v3630_v44 }
 0x1f9   : > { %3273 = vmatprep.subr.bf16.mxu1 %v3955_v0 }
 0x1fc   : > { %3274 = vmatpush3.bf16.msra.mxu1 %v3632_v45 }
 0x1fd   : > { %3311 = vmatprep.subr.bf16.mxu1 %v3955_v0 }
 0x1ff   : > { %3276 = vmatmul.mubr.bf16.vlgmr.msra.gmra.mrb[12].mxu1 %v4360_v17 }
 0x200   : > { %3313 = vmatprep.mubr.msk.bf16.mxu1 %vm3956_vm0, %v3955_v0 }
 0x292   : > { %v875_v46 = vpop.f32.mrb[4].mxu1 }
 0x293   : > { %v876_v47 = vadd.f32 %v875_v46, %v825_v28  ;;  %v3211_v48 = vpop.f32.mrb[5].mxu1  ;;  %v3641_v28 = vld [vmem:[%s4807_s8 + $0xa8] sm:$0xff]  }
 0x294   : > { %v878_v49 = vpop.f32.mrb[6].mxu1  ;;  %v1458_v48 = vld [vmem:[#allocation7 + $0x4] sm:$0x3] }
 0x295   : > { %v879_v50 = vadd.f32 %v878_v49, %v828_v30  ;;  %v3212_v51 = vpop.f32.mrb[7].mxu1  ;;  %v3643_v30 = vld [vmem:[%s4807_s8 + $0xb8] sm:$0xff]   ;;  %v3644_v49 = vld [vmem:[%s4851_s9] sm:$0xff]  }
 0x296   : > { %v3648_v51 = vld [vmem:[%s4851_s9 + $0x10] sm:$0xff]  }
 0x2b2   : > { %v981_v52 = vpop.f32.mrb[8].mxu1 }
 0x2b3   : > { %v3231_v53 = vpop.f32.mrb[9].mxu1 }
 0x2b4   : > { %v984_v54 = vpop.f32.mrb[10].mxu1 }
 0x2b5   : > { %v991_v55 = vpack.c.bf16 %v984_v54, %v981_v52  ;;  %v3232_v56 = vpop.f32.mrb[11].mxu1  ;;  %v3649_v52 = vld [vmem:[%s4851_s9 + $0x18] sm:$0xff]  }
 0x2b7   : > { %3234 = vmatpush3.bf16.msra.mxu0 %v991_v55 }
 0x2b8   : > { %3239 = vmatprep.subr.bf16.mxu0 %v3955_v0 }
 0x2ba   : > { %3236 = vmatmul.mubr.msk.bf16.vlgmr.msra.gmra.mrb[4].mxu0 %vm837_vm1, %v4455_v57 }
 0x2bb   : > { %3240 = vmatpush3.bf16.msra.mxu0 %v3623_v58  ;;  %3255 = vmatprep.mubr.msk.bf16.mxu0 %vm3956_vm0, %v3955_v0 }
 0x2bc   : > { %3241 = vmatprep.subr.bf16.mxu0 %v3955_v0 }
 0x2bf   : > { %3242 = vmatpush3.bf16.msra.mxu0 %v3625_v59 }
 0x2c0   : > { %3243 = vmatprep.subr.bf16.mxu0 %v3955_v0 }
 0x2c3   : > { %3244 = vmatpush3.bf16.msra.mxu0 %v3627_v60 }
 0x2c4   : > { %3245 = vmatprep.subr.bf16.mxu0 %v3955_v0 }
 0x2c7   : > { %3246 = vmatpush3.bf16.msra.mxu0 %v3629_v61 }
 0x2c8   : > { %3247 = vmatprep.subr.bf16.mxu0 %v3955_v0 }
 0x2cb   : > { %3248 = vmatpush3.bf16.msra.mxu0 %v3631_v62 }
 0x2cc   : > { %3249 = vmatprep.subr.bf16.mxu0 %v3955_v0 }
 0x2cf   : > { %3250 = vmatpush3.bf16.msra.mxu0 %v3633_v63 }
 0x2d0   : > { %3251 = vmatprep.subr.bf16.mxu0 %v3955_v0 }
 0x2d2   : > { %v1255_v3 = vpop.f32.mrb[12].mxu1 }
 0x2d3   : > { %3252 = vmatpush3.bf16.msra.mxu0 %v3634_v1  ;;  %v3277_v4 = vpop.f32.mrb[13].mxu1 }
 0x2d4   : > { %3253 = vmatprep.subr.bf16.mxu0 %v3955_v0  ;;  %v1258_v5 = vpop.f32.mrb[14].mxu1 }
 0x2d5   : > { %v1264_v6 = vpack.c.bf16 %v1258_v5, %v1255_v3  ;;  %v3278_v7 = vpop.f32.mrb[15].mxu1 }
 0x2d6   : > { %v4590_v7 = vld [vmem:[#allocation8] sm:$0x3] }
 0x2d7   : > { %3254 = vmatpush3.bf16.msra.mxu0 %v3635_v2 }
 0x2d8   : > { %3279 = vmatprep.subr.bf16.mxu0 %v3955_v0 }
 0x2da   : > { %3256 = vmatmul.mubr.bf16.vlgmr.msra.gmra.mrb[8].mxu0 %v4360_v17 }
 0x2db   : > { %3281 = vmatprep.mubr.msk.bf16.mxu0 %vm3956_vm0, %v3955_v0  ;;  %3280 = vmatpush3.bf16.msra.mxu0 %v1264_v6 }
 0x2dc   : > { %3285 = vmatprep.subr.bf16.mxu0 %v3955_v0 }
 0x2e2   : > { %3282 = vmatmul.mubr.msk.bf16.vlgmr.msra.gmra.mrb[12].mxu0 %vm837_vm1, %v1263_v8 }
 0x2e3   : > { %3287 = vmatprep.mubr.msk.bf16.mxu0 %vm3956_vm0, %v3955_v0 }
 0x38d   : > { %v1034_v9 = vpop.f32.mrb[4].mxu0 }
 0x38e   : > { %v4501_v10 = vadd.f32 %v1034_v9, %v876_v47  ;;  %v3237_v11 = vpop.f32.mrb[5].mxu0  ;;  %v4599_v9 = vld [vmem:[#allocation8 + $0x4] sm:$0x3] }
 0x38f   : > { %v1037_v12 = vpop.f32.mrb[6].mxu0 }
 0x390   : > { %v4503_v13 = vadd.f32 %v1037_v12, %v879_v50  ;;  %v3238_v14 = vpop.f32.mrb[7].mxu0  ;;  %v3645_v50 = vld [vmem:[%s4851_s9 + $0x8] sm:$0xff]  }
 0x3ad   : > { %v1147_v15 = vpop.f32.mrb[8].mxu0 }
 0x3ae   : > { %v3257_v16 = vpop.f32.mrb[9].mxu0 }
 0x3af   : > { %v1150_v18 = vpop.f32.mrb[10].mxu0  ;;  %v4608_v16 = vld [vmem:[%s4852_s22] sm:$0xff]  }
 0x3b0   : > { %v1155_v19 = vpack.c.bf16 %v1150_v18, %v1147_v15  ;;  %v3258_v20 = vpop.f32.mrb[11].mxu0  ;;  %v4615_v18 = vld [vmem:[%s4852_s22 + $0x8] sm:$0xff]  }
 0x3b2   : > { %3286 = vmatpush3.bf16.msra.mxu0 %v1155_v19  ;;  %v1043_v19 = vlaneseq }
 0x3b3   : > { %3291 = vmatprep.subr.bf16.mxu0 %v3955_v0 }
 0x3b5   : > { %3288 = vmatmul.mubr.msk.bf16.vlgmr.msra.gmra.mrb[16].mxu0 %vm837_vm1, %v1154_v21  ;;  %v1302_v31 = vpop.f32.mrb[12].mxu0  ;;  %v4619_v21 = vshrl.u32 %v1043_v19, 7 }
 0x3b6   : > { %3292 = vmatpush3.bf16.msra.mxu0 %v3636_v22  ;;  %3307 = vmatprep.mubr.msk.bf16.mxu0 %vm3956_vm0, %v3955_v0  ;;  %v3283_v32 = vpop.f32.mrb[13].mxu0 }
 0x3b7   : > { %3293 = vmatprep.subr.bf16.mxu0 %v3955_v0  ;;  %v1305_v33 = vpop.f32.mrb[14].mxu0 }
 0x3b8   : > { %v3284_v34 = vpop.f32.mrb[15].mxu0 }
 0x3ba   : > { %3294 = vmatpush3.bf16.msra.mxu0 %v3637_v23 }
 0x3bb   : > { %3295 = vmatprep.subr.bf16.mxu0 %v3955_v0 }
 0x3be   : > { %3296 = vmatpush3.bf16.msra.mxu0 %v3638_v24 }
 0x3bf   : > { %3297 = vmatprep.subr.bf16.mxu0 %v3955_v0 }
 0x3c2   : > { %3298 = vmatpush3.bf16.msra.mxu0 %v3639_v26 }
 0x3c3   : > { %3299 = vmatprep.subr.bf16.mxu0 %v3955_v0 }
 0x3c6   : > { %3300 = vmatpush3.bf16.msra.mxu0 %v3640_v27  ;;  %v4624_v27 = vld [vmem:[%s4853_s15] sm:$0x3]  ;;  %s597_s15 = scalar_lea.vmem [#allocation13], %s2844_s13 }
 0x3c7   : > { %3301 = vmatprep.subr.bf16.mxu0 %v3955_v0  ;;  %s2694_s11 = sshll.u32 %s597_s15, 4  ;;  %s4750_s11 = int_to_ptr.vmem [resolvable:$true] %s2694_s11 }
 0x3c8   : > { %s3865_s23 = scalar_lea.vmem %s4750_s11, 256 }
 0x3c9   : > { %p3866_p7 = scmp.ne.s32.totalorder %s4750_s11, %s3865_s23 }
 0x3ca   : > { %3302 = vmatpush3.bf16.msra.mxu0 %v3641_v28  ;;  %v1045_v28 = vsub.s32 0, %v4619_v21 }
 0x3cb   : > { %3303 = vmatprep.subr.bf16.mxu0 %v3955_v0  ;;  %p3867_p1 = pnand %p3866_p7, %p4858_p10 }
 0x3cd   : > { %p3868_p11 = pneg %p3867_p1 }
 0x3ce   : > { %3304 = vmatpush3.bf16.msra.mxu0 %v3642_v29  ;;  %v1782_v29 = vrot.slane %v4624_v27, %v1045_v28 }
 0x3cf   : > { %3305 = vmatprep.subr.bf16.mxu0 %v3955_v0 }
 0x3d2   : > { %3306 = vmatpush3.bf16.msra.mxu0 %v3643_v30 }
 0x3d3   : > { %3339 = vmatprep.subr.bf16.mxu0 %v3955_v0 }
 0x3d5   : > { %3308 = vmatmul.mubr.bf16.vlgmr.msra.gmra.mrb[20].mxu0 %v4360_v17  ;;  %v4552_v17 = vpack.c.bf16 %v607_v36, %v607_v36  ;;  %v3652_v36 = vld [vmem:[#allocation11] sm:$0xff]  }
 0x3d6   : > { %3343 = vmatprep.mubr.msk.bf16.mxu0 %vm3956_vm0, %v3955_v0  ;;  %3340 = vmatpush3.bf16.msra.mxu0 %v3646_v35 }
 0x3d7   : > { %3341 = vmatprep.subr.bf16.mxu0 %v3955_v0 }
 0x3da   : > { %3342 = vmatpush3.bf16.msra.mxu0 %v3647_v37 }
 0x3db   : > { %3353 = vmatprep.subr.bf16.mxu0 %v3955_v0 }
 0x3dd   : > { %3344 = vmatmul.mubr.msk.bf16.vlgmr.msra.gmra.mrb[24].mxu0 %vm1521_vm2, %v4552_v17 }
 0x3de   : > { %3357 = vmatprep.mubr.msk.bf16.mxu0 %vm3956_vm0, %v3955_v0  ;;  %3354 = vmatpush3.bf16.msra.mxu0 %v4608_v16 }
 0x3df   : > { %3355 = vmatprep.subr.bf16.mxu0 %v3955_v0 }
 0x3e2   : > { %3356 = vmatpush3.bf16.msra.mxu0 %v4615_v18 }
 0x3e3   : > { %3367 = vmatprep.subr.bf16.mxu0 %v3955_v0 }
 0x488   : > { %v1345_v38 = vpop.f32.mrb[16].mxu0 }
 0x489   : > { %v1346_v39 = vadd.f32 %v1345_v38, %v1302_v31  ;;  %v3289_v40 = vpop.f32.mrb[17].mxu0  ;;  %v3653_v38 = vld [vmem:[#allocation11 + $0x8] sm:$0xff]  }
 0x48a   : > { %v1348_v41 = vpop.f32.mrb[18].mxu0 }
 0x48b   : > { %v3290_v42 = vpop.f32.mrb[19].mxu0 }
 0x4a8   : > { %v1450_v43 = vpop.f32.mrb[20].mxu0 }
 0x4a9   : > { %v3309_v44 = vpop.f32.mrb[21].mxu0 }
 0x4aa   : > { %v1453_v45 = vpop.f32.mrb[22].mxu0 }
 0x4ab   : > { %v1459_v46 = vpack.c.bf16 %v1453_v45, %v1450_v43  ;;  %v3310_v47 = vpop.f32.mrb[23].mxu0  ;;  %v4643_v45 = vld [vmem:[%s4854_s17] sm:$0xff]  }
 0x4ad   : > { %3312 = vmatpush3.bf16.msra.mxu1 %v1459_v46  ;;  %v3655_v46 = vld [vmem:[#allocation11 + $0x10] sm:$0xff]  }
 0x4ae   : > { %3317 = vmatprep.subr.bf16.mxu1 %v3955_v0 }
 0x4b0   : > { %3314 = vmatmul.mubr.msk.bf16.vlgmr.msra.gmra.mrb[16].mxu1 %vm837_vm1, %v1458_v48  ;;  %v1723_v53 = vpop.f32.mrb[24].mxu0  ;;  %v3656_v48 = vld [vmem:[#allocation11 + $0x18] sm:$0xff]  }
 0x4b1   : > { %3318 = vmatpush3.bf16.msra.mxu1 %v3644_v49  ;;  %3321 = vmatprep.mubr.msk.bf16.mxu1 %vm3956_vm0, %v3955_v0  ;;  %v3345_v54 = vpop.f32.mrb[25].mxu0  ;;  %v1731_v3 = vpack.c.bf16 %v1723_v53, %v1723_v53 }
 0x4b2   : > { %3319 = vmatprep.subr.bf16.mxu1 %v3955_v0  ;;  %v1726_v55 = vpop.f32.mrb[26].mxu0  ;;  %v3657_v54 = vld [vmem:[#allocation11 + $0x20] sm:$0xff]  }
 0x4b3   : > { %v3346_v56 = vpop.f32.mrb[27].mxu0  ;;  %v1736_v8 = vsel %vm1628_vm3, %v1731_v3, 0  ;;  %v3658_v55 = vld [vmem:[#allocation11 + $0x28] sm:$0xff]  }
 0x4b5   : > { %3320 = vmatpush3.bf16.msra.mxu1 %v3645_v50 }
 0x4b6   : > { %3325 = vmatprep.subr.bf16.mxu1 %v3955_v0 }
 0x4b8   : > { %3322 = vmatmul.mubr.msk.bf16.vlgmr.msra.gmra.mrb[20].mxu1 %vm1521_vm2, %v4552_v17 }
 0x4b9   : > { %3326 = vmatpush3.bf16.msra.mxu1 %v3648_v51  ;;  %3329 = vmatprep.mubr.msk.bf16.mxu1 %vm3956_vm0, %v3955_v0 }
 0x4ba   : > { %3327 = vmatprep.subr.bf16.mxu1 %v3955_v0 }
 0x4bd   : > { %3328 = vmatpush3.bf16.msra.mxu1 %v3649_v52 }
 0x4be   : > { %3333 = vmatprep.subr.bf16.mxu1 %v3955_v0 }
 0x4c0   : > { %3330 = vmatmul.mubr.msk.bf16.vlgmr.msra.gmra.mrb[24].mxu1 %vm1521_vm2, %v4552_v17 }
 0x4c1   : > { %3335 = vmatprep.mubr.msk.bf16.mxu1 %vm3956_vm0, %v3955_v0 }
 0x583   : > { %v1497_v58 = vpop.f32.mrb[16].mxu1 }
 0x584   : > { %v4587_v59 = vadd.f32 %v1497_v58, %v1346_v39  ;;  %v3315_v60 = vpop.f32.mrb[17].mxu1 }
 0x585   : > { %v1500_v61 = vpop.f32.mrb[18].mxu1 }
 0x586   : > { %v3316_v62 = vpop.f32.mrb[19].mxu1 }
 0x58b   : > { %v1559_v63 = vpop.f32.mrb[20].mxu1 }
 0x58c   : > { %v1566_v1 = vpack.c.bf16 %v1559_v63, %v1559_v63  ;;  %v3323_v2 = vpop.f32.mrb[21].mxu1 }
 0x58d   : > { %v1562_v4 = vpop.f32.mrb[22].mxu1 }
 0x58e   : > { %v1630_v5 = vsel %vm1628_vm3, %v1566_v1, 0  ;;  %v3324_v6 = vpop.f32.mrb[23].mxu1 }
 0x58f   : > { %3334 = vmatpush3.bf16.msra.mxu1 %v1630_v5 }
 0x590   : > { %3347 = vmatprep.subr.bf16.mxu1 %v3955_v0 }
 0x592   : > { %3336 = vmatmul.mubr.msk.bf16.vlgmr.msra.gmra.mrb[28].mxu1 %vm1624_vm4, %v4590_v7 }
 0x593   : > { %3348 = vmatpush3.bf16.msra.mxu1 %v1736_v8  ;;  %3349 = vmatprep.mubr.msk.bf16.mxu1 %vm3956_vm0, %v3955_v0  ;;  %v1618_v11 = vpop.f32.mrb[24].mxu1 }
 0x594   : > { %3361 = vmatprep.subr.bf16.mxu1 %v3955_v0  ;;  %v3331_v12 = vpop.f32.mrb[25].mxu1 }
 0x595   : > { %v1621_v14 = vpop.f32.mrb[26].mxu1 }
 0x596   : > { %v3332_v15 = vpop.f32.mrb[27].mxu1 }
 0x59a   : > { %3350 = vmatmul.mubr.msk.bf16.vlgmr.msra.gmra.mrb[32].mxu1 %vm1624_vm4, %v4599_v9 }
 0x59b   : > { %3363 = vmatprep.mubr.msk.bf16.mxu1 %vm3956_vm0, %v3955_v0 }
 0x665   : > { %v1666_v20 = vpop.f32.mrb[28].mxu1 }
 0x666   : > { %v1667_v22 = vadd.f32 %v1666_v20, %v1618_v11  ;;  %v3337_v23 = vpop.f32.mrb[29].mxu1 }
 0x667   : > { %v1669_v24 = vpop.f32.mrb[30].mxu1 }
 0x668   : > { %v3338_v26 = vpop.f32.mrb[31].mxu1 }
 0x66d   : > { %v1772_v30 = vpop.f32.mrb[32].mxu1 }
 0x66e   : > { %v1778_v31 = vadd.f32 %v1772_v30, %v1667_v22  ;;  %v3351_v32 = vpop.f32.mrb[33].mxu1 }
 0x66f   : > { %v1775_v33 = vpop.f32.mrb[34].mxu1 }
 0x670   : > { %v1783_v34 = vadd.f32 %v1782_v29, %v1778_v31  ;;  %v3352_v35 = vpop.f32.mrb[35].mxu1  ;;  %v4676_v29 = vld [vmem:[%s4855_s16] sm:$0x3]  ;;  %s4755_s16 = scalar_lea.hbm %s4857_s12, %s3035_s25 }
 0x671   : > { %v1046_v30 = vrot.slane %v4676_v29, %v1045_v28 }
 0x672   : > { %v1784_v37 = vpack.c.bf16 %v1783_v34, %v1783_v34 }
 0x673   : > { %v1047_v31 = vadd.f32 %v1046_v30, %v4501_v10  ;;  %v1048_v33 = vadd.f32 %v1046_v30, %v4503_v13  ;;  %v3681_v30 = vld [vmem:[#allocation10 + $0xb0] sm:$0xff]  }
 0x674   : > { %3358 = vmatmul.mubr.msk.bf16.vlgmr.msra.gmra.mrb[28].mxu0 %vm1521_vm2, %v1784_v37  ;;  %v2154_v37 = vsub.s32 1, %v4619_v21 }
 0x675   : > { %3368 = vmatpush3.bf16.msra.mxu0 %v3652_v36  ;;  %3371 = vmatprep.mubr.msk.bf16.mxu0 %vm3956_vm0, %v3955_v0 }
 0x676   : > { %3369 = vmatprep.subr.bf16.mxu0 %v3955_v0  ;;  %v2155_v28 = vrot.slane %v4624_v27, %v2154_v37 }
 0x679   : > { %3370 = vmatpush3.bf16.msra.mxu0 %v3653_v38 }
 0x67a   : > { %3383 = vmatprep.subr.bf16.mxu0 %v3955_v0 }
 0x67c   : > { %3372 = vmatmul.mubr.msk.bf16.vlgmr.msra.gmra.mrb[32].mxu0 %vm1521_vm2, %v4552_v17 }
 0x67d   : > { %3385 = vmatprep.mubr.msk.bf16.mxu0 %vm3956_vm0, %v3955_v0 }
 0x747   : > { %v1834_v39 = vpop.f32.mrb[28].mxu0 }
 0x748   : > { %v1840_v40 = vpack.c.bf16 %v1834_v39, %v1834_v39  ;;  %v3359_v41 = vpop.f32.mrb[29].mxu0 }
 0x749   : > { %v1837_v42 = vpop.f32.mrb[30].mxu0 }
 0x74a   : > { %v1850_v43 = vsel %vm1628_vm3, %v1840_v40, 0  ;;  %v3360_v44 = vpop.f32.mrb[31].mxu0 }
 0x74b   : > { %3362 = vmatpush3.bf16.msra.mxu1 %v1850_v43 }
 0x74c   : > { %3375 = vmatprep.subr.bf16.mxu1 %v3955_v0 }
 0x74e   : > { %3364 = vmatmul.mubr.msk.bf16.vlgmr.msra.gmra.mrb[36].mxu1 %vm1624_vm4, %v4643_v45 }
 0x74f   : > { %v1943_v47 = vpop.f32.mrb[32].mxu0  ;;  %3376 = vmatpush3.bf16.msra.mxu1 %v3655_v46  ;;  %3379 = vmatprep.mubr.msk.bf16.mxu1 %vm3956_vm0, %v3955_v0  ;;  %v610_v46 = vld [vmem:[%s4856_s29] sm:$0xf]  ;;  %s3869_s29 = sshll.u32 %s3957_s24, 4  ;;  %s3870_s29 = int_to_ptr.vmem [resolvable:$false] %s3869_s29 }
 0x750   : > { %v1949_v49 = vpack.c.bf16 %v1943_v47, %v1943_v47  ;;  %3377 = vmatprep.subr.bf16.mxu1 %v3955_v0  ;;  %v3373_v50 = vpop.f32.mrb[33].mxu0  ;;  %v1504_v47 = vadd.f32 %v4587_v59, %v610_v46  ;;  %v3666_v59 = vld [vmem:[#allocation10 + $0x18] sm:$0xff]   ;;  %s3871_s13 = scalar_lea.vmem %s3870_s29, 512  ;;  %p3872_p12 = scmp.lt.s32.totalorder %s4750_s11, %s3870_s29 }
 0x751   : > { %v1946_v51 = vpop.f32.mrb[34].mxu0  ;;  %v3660_v50 = vld [vmem:[#allocation10] sm:$0xff]   ;;  %p3873_p13 = scmp.lt.s32.totalorder %s3871_s13, %s3865_s23 }
 0x752   : > { %v2008_v52 = vsel %vm1628_vm3, %v1949_v49, 0  ;;  %v3374_v53 = vpop.f32.mrb[35].mxu0  ;;  %v3662_v51 = vld [vmem:[#allocation10 + $0x8] sm:$0xff]  }
 0x753   : > { %3378 = vmatpush3.bf16.msra.mxu1 %v3656_v48  ;;  %3384 = vmatpush3.bf16.msra.mxu0 %v2008_v52  ;;  %v3664_v52 = vld [vmem:[#allocation10 + $0x10] sm:$0xff]   ;;  %v3668_v53 = vld [vmem:[#allocation10 + $0x20] sm:$0xff]   ;;  %p3874_p3 = por %p3873_p13, %p3872_p12 }
 0x754   : > { %3389 = vmatprep.subr.bf16.mxu1 %v3955_v0  ;;  %3397 = vmatprep.subr.bf16.mxu0 %v3955_v0 }
 0x755   : > { %p3875_p6 = pnand %p3874_p3, %p3868_p11 }
 0x756   : > { %3380 = vmatmul.mubr.msk.bf16.vlgmr.msra.gmra.mrb[40].mxu1 %vm1521_vm2, %v4552_v17  ;;  %3386 = vmatmul.mubr.msk.bf16.vlgmr.msra.gmra.mrb[36].mxu0 %vm1624_vm4, %v4590_v7 }
 0x757   : > { %3390 = vmatpush3.bf16.msra.mxu1 %v3657_v54  ;;  %3393 = vmatprep.mubr.msk.bf16.mxu1 %vm3956_vm0, %v3955_v0  ;;  %v3670_v54 = vld [vmem:[#allocation10 + $0x28] sm:$0xff]  }
 0x758   : > { %3391 = vmatprep.subr.bf16.mxu1 %v3955_v0  ;;  %3399 = vmatprep.mubr.msk.bf16.mxu0 %vm3956_vm0, %v3955_v0 }
 0x75b   : > { %3392 = vmatpush3.bf16.msra.mxu1 %v3658_v55 }
 0x75c   : > { %3403 = vmatprep.subr.bf16.mxu1 %v3955_v0 }
 0x75e   : > { %3394 = vmatmul.mubr.msk.bf16.vlgmr.msra.gmra.mrb[44].mxu1 %vm1521_vm2, %v4552_v17 }
 0x75f   : > { %3404 = vmatpush3.bf16.msra.mxu1 %v4608_v16  ;;  %3407 = vmatprep.mubr.msk.bf16.mxu1 %vm3956_vm0, %v3955_v0 }
 0x760   : > { %3405 = vmatprep.subr.bf16.mxu1 %v3955_v0 }
 0x763   : > { %3406 = vmatpush3.bf16.msra.mxu1 %v4615_v18 }
 0x764   : > { %3417 = vmatprep.subr.bf16.mxu1 %v3955_v0 }
 0x821   : > { %v1886_v56 = vpop.f32.mrb[36].mxu1 }
 0x822   : > { %v2157_v58 = vsub.f32 0.0, %v1886_v56  ;;  %v3365_v60 = vpop.f32.mrb[37].mxu1 }
 0x823   : > { %v1889_v61 = vpop.f32.mrb[38].mxu1 }
 0x824   : > { %v2159_v62 = vmul.f32 1.442695, %v2157_v58  ;;  %v2158_v63 = vsub.f32 0.0, %v1889_v61  ;;  %v3366_v1 = vpop.f32.mrb[39].mxu1 }
 0x825   : > { %v3661_v1 = vld [vmem:[#allocation10 + $0x48] sm:$0xff]  }
 0x826   : > { %3683 = vpow2.f32 %v2159_v62  ;;  %v2161_v17 = vmul.f32 1.442695, %v2158_v63  ;;  %v3659_v63 = vld [vmem:[#allocation10 + $0x40] sm:$0xff]  }
 0x828   : > { %3685 = vpow2.f32 %v2161_v17  ;;  %v3663_v17 = vld [vmem:[#allocation10 + $0x50] sm:$0xff]  }
 0x829   : > { %v2001_v2 = vpop.f32.mrb[40].mxu1  ;;  %v2044_v3 = vpop.f32.mrb[36].mxu0 }
 0x82a   : > { %v2045_v4 = vadd.f32 %v2044_v3, %v2001_v2  ;;  %v3381_v5 = vpop.f32.mrb[41].mxu1  ;;  %v3387_v6 = vpop.f32.mrb[37].mxu0  ;;  %v3665_v2 = vld [vmem:[#allocation10 + $0x58] sm:$0xff]   ;;  %v3667_v3 = vld [vmem:[#allocation10 + $0x60] sm:$0xff]  }
 0x82b   : > { %v2004_v7 = vpop.f32.mrb[42].mxu1  ;;  %v2047_v8 = vpop.f32.mrb[38].mxu0  ;;  %v3672_v5 = vld [vmem:[#allocation10 + $0x30] sm:$0xff]   ;;  %v3673_v6 = vld [vmem:[#allocation10 + $0x78] sm:$0xff]  }
 0x82c   : > { %v3382_v11 = vpop.f32.mrb[43].mxu1  ;;  %v3388_v12 = vpop.f32.mrb[39].mxu0  ;;  %v3674_v7 = vld [vmem:[#allocation10 + $0x38] sm:$0xff]  }
 0x830   : > { %v3684_v14 = vpop.eup %3683 }
 0x831   : > { %v2163_v15 = vadd.f32 1.0, %v3684_v14  ;;  %v2101_v16 = vpop.f32.mrb[44].mxu1 }
 0x832   : > { %v3686_v18 = vpop.eup %3685  ;;  %v2107_v19 = vpack.c.bf16 %v2101_v16, %v2101_v16  ;;  %v3395_v20 = vpop.f32.mrb[45].mxu1 }
 0x833   : > { %3687 = vrcp.f32 %v2163_v15  ;;  %v2164_v22 = vadd.f32 1.0, %v3686_v18  ;;  %v2104_v23 = vpop.f32.mrb[46].mxu1  ;;  %v3675_v18 = vld [vmem:[#allocation10 + $0x80] sm:$0xff]   ;;  %v3676_v20 = vld [vmem:[#allocation10 + $0x88] sm:$0xff]  }
 0x834   : > { %v2109_v24 = vsel %vm1628_vm3, %v2107_v19, 0  ;;  %v3396_v26 = vpop.f32.mrb[47].mxu1  ;;  %v3678_v23 = vld [vmem:[#allocation10 + $0x98] sm:$0xff]  }
 0x835   : > { %3689 = vrcp.f32 %v2164_v22  ;;  %3398 = vmatpush3.bf16.msra.mxu0 %v2109_v24  ;;  %v3677_v22 = vld [vmem:[#allocation10 + $0x90] sm:$0xff]   ;;  %v3679_v24 = vld [vmem:[#allocation10 + $0xa0] sm:$0xff]   ;;  %v3680_v26 = vld [vmem:[#allocation10 + $0xa8] sm:$0xff]  }
 0x836   : > { %3411 = vmatprep.subr.bf16.mxu0 %v3955_v0 }
 0x838   : > { %3400 = vmatmul.mubr.msk.bf16.vlgmr.msra.gmra.mrb[40].mxu0 %vm1624_vm4, %v4599_v9 }
 0x839   : > { %3413 = vmatprep.mubr.msk.bf16.mxu0 %vm3956_vm0, %v3955_v0 }
 0x83d   : > { %v3688_v32 = vpop.eup %3687 }
 0x83e   : > { %v4688_v34 = vmul.f32 %v3688_v32, %v1047_v31  ;;  %v3682_v31 = vld [vmem:[#allocation10 + $0xb8] sm:$0xff]  }
 0x83f   : > { %v3690_v35 = vpop.eup %3689 }
 0x840   : > { %v4690_v36 = vmul.f32 %v3690_v35, %v1048_v33 }
 0x90b   : > { %v2145_v9 = vpop.f32.mrb[40].mxu0 }
 0x90c   : > { %v2151_v38 = vadd.f32 %v2145_v9, %v2045_v4  ;;  %v3401_v39 = vpop.f32.mrb[41].mxu0  ;;  %v3671_v4 = vld [vmem:[#allocation10 + $0x70] sm:$0xff]  }
 0x90d   : > { %v2148_v40 = vpop.f32.mrb[42].mxu0 }
 0x90e   : > { %v2156_v41 = vadd.f32 %v2155_v28, %v2151_v38  ;;  %v3402_v10 = vpop.f32.mrb[43].mxu0 }
 0x910   : > { %v2169_v42 = vsub.f32 0.0, %v2156_v41 }
 0x912   : > { %v2170_v43 = vmul.f32 1.442695, %v2169_v42 }
 0x914   : > { %3691 = vpow2.f32 %v2170_v43 }
 0x91e   : > { %v3692_v13 = vpop.eup %3691 }
 0x91f   : > { %v2172_v44 = vadd.f32 1.0, %v3692_v13 }
 0x921   : > { %3693 = vrcp.f32 %v2172_v44 }
 0x92b   : > { %v3694_v48 = vpop.eup %3693 }
 0x92c   : > { %v2174_v27 = vmul.f32 %v3694_v48, %v1504_v47 }
 0x92e   : > { %v2175_v49 = vpack.c.bf16 %v2174_v27, %v2174_v27 }
 0x930   : > { %3408 = vmatmul.mubr.msk.bf16.vlgmr.msra.gmra.mrb[48].mxu1 %vm1521_vm2, %v2175_v49 }
 0x931   : > { %3433 = vmatprep.mubr.msk.bf16.mxu1 %vm3956_vm0, %v3955_v0  ;;  %3418 = vmatpush3.bf16.msra.mxu1 %v3660_v50 }
 0x932   : > { %3419 = vmatprep.subr.bf16.mxu1 %v3955_v0 }
 0x935   : > { %3420 = vmatpush3.bf16.msra.mxu1 %v3662_v51 }
 0x936   : > { %3421 = vmatprep.subr.bf16.mxu1 %v3955_v0 }
 0x939   : > { %3422 = vmatpush3.bf16.msra.mxu1 %v3664_v52 }
 0x93a   : > { %3423 = vmatprep.subr.bf16.mxu1 %v3955_v0 }
 0x93d   : > { %3424 = vmatpush3.bf16.msra.mxu1 %v3666_v59 }
 0x93e   : > { %3425 = vmatprep.subr.bf16.mxu1 %v3955_v0 }
 0x941   : > { %3426 = vmatpush3.bf16.msra.mxu1 %v3668_v53 }
 0x942   : > { %3427 = vmatprep.subr.bf16.mxu1 %v3955_v0 }
 0x945   : > { %3428 = vmatpush3.bf16.msra.mxu1 %v3670_v54 }
 0x946   : > { %3429 = vmatprep.subr.bf16.mxu1 %v3955_v0 }
 0x949   : > { %3430 = vmatpush3.bf16.msra.mxu1 %v3672_v5 }
 0x94a   : > { %3431 = vmatprep.subr.bf16.mxu1 %v3955_v0 }
 0x94d   : > { %3432 = vmatpush3.bf16.msra.mxu1 %v3674_v7 }
 0x94e   : > { %3457 = vmatprep.subr.bf16.mxu1 %v3955_v0 }
 0xa03   : > { %v2213_v55 = vpop.f32.mrb[48].mxu1 }
 0xa04   : > { %v2219_v56 = vpack.c.bf16 %v2213_v55, %v2213_v55  ;;  %v3409_v58 = vpop.f32.mrb[49].mxu1 }
 0xa05   : > { %v2216_v60 = vpop.f32.mrb[50].mxu1 }
 0xa06   : > { %v2221_v61 = vsel %vm1628_vm3, %v2219_v56, 0  ;;  %v3410_v62 = vpop.f32.mrb[51].mxu1 }
 0xa07   : > { %3412 = vmatpush3.bf16.msra.mxu0 %v2221_v61 }
 0xa08   : > { %3437 = vmatprep.subr.bf16.mxu0 %v3955_v0 }
 0xa0a   : > { %3414 = vmatmul.mubr.msk.bf16.vlgmr.msra.gmra.mrb[44].mxu0 %vm1624_vm4, %v4643_v45  ;;  %v3669_v45 = vld [vmem:[#allocation10 + $0x68] sm:$0xff]  }
 0xa0b   : > { %3438 = vmatpush3.bf16.msra.mxu0 %v3659_v63  ;;  %3453 = vmatprep.mubr.msk.bf16.mxu0 %vm3956_vm0, %v3955_v0 }
 0xa0c   : > { %3439 = vmatprep.subr.bf16.mxu0 %v3955_v0 }
 0xa0f   : > { %3440 = vmatpush3.bf16.msra.mxu0 %v3661_v1 }
 0xa10   : > { %3441 = vmatprep.subr.bf16.mxu0 %v3955_v0 }
 0xa13   : > { %3442 = vmatpush3.bf16.msra.mxu0 %v3663_v17 }
 0xa14   : > { %3443 = vmatprep.subr.bf16.mxu0 %v3955_v0 }
 0xa17   : > { %3444 = vmatpush3.bf16.msra.mxu0 %v3665_v2 }
 0xa18   : > { %3445 = vmatprep.subr.bf16.mxu0 %v3955_v0 }
 0xa1b   : > { %3446 = vmatpush3.bf16.msra.mxu0 %v3667_v3 }
 0xa1c   : > { %3447 = vmatprep.subr.bf16.mxu0 %v3955_v0 }
 0xa1f   : > { %3448 = vmatpush3.bf16.msra.mxu0 %v3669_v45 }
 0xa20   : > { %3449 = vmatprep.subr.bf16.mxu0 %v3955_v0 }
 0xa23   : > { %3450 = vmatpush3.bf16.msra.mxu0 %v3671_v4 }
 0xa24   : > { %3451 = vmatprep.subr.bf16.mxu0 %v3955_v0 }
 0xa27   : > { %3452 = vmatpush3.bf16.msra.mxu0 %v3673_v6 }
 0xa28   : > { %3463 = vmatprep.subr.bf16.mxu0 %v3955_v0 }
 0xadd   : > { %v2257_v8 = vpop.f32.mrb[44].mxu0 }
 0xade   : > { %v2264_v11 = vadd.f32 %v2257_v8, %v4688_v34  ;;  %v3415_v12 = vpop.f32.mrb[45].mxu0 }
 0xadf   : > { %v2260_v14 = vpop.f32.mrb[46].mxu0 }
 0xae0   : > { %v2265_v15 = vadd.f32 %v2260_v14, %v4690_v36  ;;  %v3416_v16 = vpop.f32.mrb[47].mxu0 }
 0xae2   : > { %v2266_v19 = vpack.c.bf16 %v2265_v15, %v2264_v11 }
 0xae4   : > { %3434 = vmatmul.mubr.bf16.vlgmr.msra.gmra.mrb[52].mxu1 %v2266_v19  ;;  %3454 = vmatmul.mubr.bf16.vlgmr.msra.gmra.mrb[48].mxu0 %v2266_v19 }
 0xae5   : > { %3464 = vmatpush3.bf16.msra.mxu0 %v3675_v18  ;;  %3479 = vmatprep.mubr.msk.bf16.mxu0 %vm3956_vm0, %v3955_v0 }
 0xae6   : > { %3465 = vmatprep.subr.bf16.mxu0 %v3955_v0  ;;  %3459 = vmatprep.mubr.msk.bf16.mxu1 %vm3956_vm0, %v3955_v0 }
 0xae9   : > { %3466 = vmatpush3.bf16.msra.mxu0 %v3676_v20 }
 0xaea   : > { %3467 = vmatprep.subr.bf16.mxu0 %v3955_v0 }
 0xaed   : > { %3468 = vmatpush3.bf16.msra.mxu0 %v3677_v22 }
 0xaee   : > { %3469 = vmatprep.subr.bf16.mxu0 %v3955_v0 }
 0xaf1   : > { %3470 = vmatpush3.bf16.msra.mxu0 %v3678_v23 }
 0xaf2   : > { %3471 = vmatprep.subr.bf16.mxu0 %v3955_v0 }
 0xaf5   : > { %3472 = vmatpush3.bf16.msra.mxu0 %v3679_v24 }
 0xaf6   : > { %3473 = vmatprep.subr.bf16.mxu0 %v3955_v0 }
 0xaf9   : > { %3474 = vmatpush3.bf16.msra.mxu0 %v3680_v26 }
 0xafa   : > { %3475 = vmatprep.subr.bf16.mxu0 %v3955_v0 }
 0xafd   : > { %3476 = vmatpush3.bf16.msra.mxu0 %v3681_v30 }
 0xafe   : > { %3477 = vmatprep.subr.bf16.mxu0 %v3955_v0 }
 0xb01   : > { %3478 = vmatpush3.bf16.msra.mxu0 %v3682_v31 }
 0xb04   : > { %3480 = vmatmul.mubr.bf16.vlgmr.msra.gmra.mrb[52].mxu0 %v2266_v19 }
 0xbb7   : > { %v2365_v32 = vpop.f32.mrb[52].mxu1  ;;  %v2472_v33 = vpop.f32.mrb[48].mxu0 }
 0xbb8   : > { %v3435_v34 = vpop.f32.mrb[53].mxu1  ;;  %v3455_v35 = vpop.f32.mrb[49].mxu0 }
 0xbb9   : > { %v2368_v36 = vpop.f32.mrb[54].mxu1  ;;  %v2475_v28 = vpop.f32.mrb[50].mxu0 }
 0xbba   : > { %v2372_v9 = vpack.c.bf16 %v2368_v36, %v2365_v32  ;;  %v3436_v38 = vpop.f32.mrb[55].mxu1  ;;  %v3456_v39 = vpop.f32.mrb[51].mxu0 }
 0xbbc   : > { %3458 = vmatpush3.bf16.msra.mxu1 %v2372_v9 }
 0xbbd   : > { %3483 = vmatprep.subr.bf16.mxu1 %v3955_v0 }
 0xbbf   : > { %3460 = vmatmul.mubr.msk.bf16.vlgmr.msra.gmra.mrb[56].mxu1 %vm837_vm1, %v4378_v25 }
 0xbc0   : > { %3485 = vmatprep.mubr.msk.bf16.mxu1 %vm3956_vm0, %v3955_v0  ;;  %v2673_v0 = vrot.slane %v4676_v29, %v2154_v37 }
 0xbd7   : > { %v2619_v40 = vpop.f32.mrb[52].mxu0 }
 0xbd8   : > { %v3481_v41 = vpop.f32.mrb[53].mxu0 }
 0xbd9   : > { %v2622_v10 = vpop.f32.mrb[54].mxu0 }
 0xbda   : > { %v2626_v42 = vpack.c.bf16 %v2622_v10, %v2619_v40  ;;  %v3482_v43 = vpop.f32.mrb[55].mxu0 }
 0xbdc   : > { %3484 = vmatpush3.bf16.msra.mxu1 %v2626_v42 }
 0xbdf   : > { %3486 = vmatmul.mubr.msk.bf16.vlgmr.msra.gmra.mrb[60].mxu1 %vm837_vm1, %v4455_v57 }
 0xc92   : > { %v2513_v13 = vpop.f32.mrb[56].mxu1 }
 0xc93   : > { %v2514_v44 = vadd.f32 %v2513_v13, %v2472_v33  ;;  %v3461_v46 = vpop.f32.mrb[57].mxu1 }
 0xc94   : > { %v2516_v47 = vpop.f32.mrb[58].mxu1 }
 0xc95   : > { %v2517_v48 = vadd.f32 %v2516_v47, %v2475_v28  ;;  %v3462_v27 = vpop.f32.mrb[59].mxu1 }
 0xcb2   : > { %v2661_v25 = vpop.f32.mrb[60].mxu1 }
 0xcb3   : > { %v2668_v49 = vadd.f32 %v2661_v25, %v2514_v44  ;;  %v3487_v50 = vpop.f32.mrb[61].mxu1 }
 0xcb4   : > { %v2664_v57 = vpop.f32.mrb[62].mxu1 }
 0xcb5   : > { %v2674_v51 = vadd.f32 %v2673_v0, %v2668_v49  ;;  %v2669_v52 = vadd.f32 %v2664_v57, %v2517_v48  ;;  %v3488_v59 = vpop.f32.mrb[63].mxu1 }
 0xcb7   : > { %v2676_v53 = vmax.f32 %v2674_v51, 0.0  ;;  %v2675_v21 = vadd.f32 %v2673_v0, %v2669_v52 }
 0xcb9   : > { %2678 = vst [vmem:[%s597_s15] sm:$0xff] %v2676_v53  ;;  %v2677_v29 = vmax.f32 %v2675_v21, 0.0 }
 0xcbb   : > { %2679 = vst [vmem:[%s597_s15 + $0x8] sm:$0xff] %v2677_v29 }
 0xcbc   : > { %3878 = shalt.err (!%p3875_p6)
}
 0xcbd   : > { %s3879_s15 = scalar_lea.hbm %s4755_s16, 256  ;;  %s3883_s30 = scalar_lea.hbm %s4857_s12, 512 }
 0xcbe   : > { %p3880_p9 = scmp.ne.s32.totalorder %s4755_s16, %s3879_s15  ;;  %p3884_p0 = scmp.lt.u32.totalorder %s4755_s16, %s4857_s12 }
 0xcbf   : > { %p3885_p5 = scmp.lt.u32.totalorder %s3883_s30, %s3879_s15  ;;  %p3887_p7 = scmp.lt.u32.totalorder %s3879_s15, %s4755_s16 }
 0xcc0   : > { %p3881_p4 = pnand %p3880_p9, %p4858_p10 }
 0xcc1   : > { %p3886_p2 = por %p3885_p5, %p3884_p0 }
 0xcc2   : > { %p3882_p8 = pneg %p3881_p4 }
 0xcc3   : > { %p3888_p1 = por %p3887_p7, %p3886_p2 }
 0xcc5   : > { %p3889_p11 = pnand %p3888_p1, %p3882_p8 }
 0xcc7   : > { %3892 = shalt.err (!%p3889_p11)
}
 0xcc8   : > { %s3958_s23 = smov 128   ;;  %s3959_s13 = smov 8  }
 0xcc9   : > { %3511 = dma.vmem_to_hbm [thread:$0]  (%p4858_p10), %s4750_s11, 256, %s4755_s16, %s2681_s28, %s3958_s23, %s3958_s23, %s3959_s13  }
 0xcca PF: > { %s2709_s25 = sand.u32 1, %s3931_s18   ;;  %p4859_p12 = scmp.ne.s32.totalorder %s4842_s5, 0 }
 0xccb   : > { %p4860_p13 = scmp.ge.s32.totalorder %s3943_s21, 2  ;;  %s2710_s15 = scalar_lea.sflag [#allocation4], %s2709_s25 }
 0xccd   : > { %p3534_p3 = pnand %p4860_p13, %p4859_p12 }
 0xccf   : > { %3926 = dma.done.wait (!%p3534_p3), %s2710_s15, 256  }
 0xcd0   : > { %3928 = vsyncadd (!%p3534_p3), %s2710_s15, 4294967040  ;;  %p31_p6 = scmp.ge.s32.totalorder %s4203_s26, 4   ;;  %s4861_s18 = smov %s3935_s19 }
 0xcd1   : > { %s4862_s19 = smov %s3939_s20  ;;  %s4863_s20 = smov %s4215_s14 }
 0xcd2   : > { %s4864_s21 = smov %s4203_s26  ;;  %33 = sbr.rel (!%p31_p6) target bundleno = 17 (0x11), region = 162 }
 0xcd9   :  { %2715 = vsyncpa [#allocation3], 1 }
 0xcda   :  { %2717 = vsyncpa [#allocation3 + $0x1], 1 }
 0xcdb   :  { %2718 = vsyncpa [#allocation6], 1 }
 0xcdc   :  { %2719 = vsyncpa [#allocation9], 1 }
 0xcdd   :  { %2720 = vsyncpa [#allocation12], 1 }
 0xcde   :  { %2721 = vsyncpa [#allocation4], 1 }
 0xcdf   :  { %2723 = vsyncpa [#allocation4 + $0x1], 1 }

</bundles_post_ra>
